<compile_context>
chip_gen: v7x
topology: tpu7x:2x2x1
jax: 0.10.0
libtpu: 0.0.40
codegen_flags: <defaults>
</compile_context>

<pallas_src>
import functools

import jax
import jax.numpy as jnp
import numpy as np
from jax import lax
from jax.experimental import pallas as pl
from jax.experimental.pallas import tpu as pltpu


# ------------------------------------------------------------- fused kernel
def fused_rnn_kernel(x_ref, wih0_ref, b0_ref, wcat_ref, b1_ref,
                     fcw_ref, fcb_ref,
                     out_ref, xp0_ref, h1_all,
                     *, seq_len, batch, hidden):
    S, B, H = seq_len, batch, hidden
    f32 = jnp.float32

    # Hoist weight / bias loads out of the (unrolled) time loop.
    wcat = wcat_ref[...]                      # (2H, 8H)
    b1 = b1_ref[...]                          # (1, 4H)

    def cell(gates, c_prev):
        # Full-vreg sigmoid / tanh (EUP slot), then lane slices for i,f,g,o
        # (PyTorch gate ordering: i, f, g, o).
        sig = jax.nn.sigmoid(gates)
        th = jnp.tanh(gates)
        i = sig[:, 0 * H:1 * H]
        f = sig[:, 1 * H:2 * H]
        g = th[:, 2 * H:3 * H]
        o = sig[:, 3 * H:4 * H]
        c = f * c_prev + i * g
        h = o * jnp.tanh(c)
        return h, c

    # ---- phase 0: layer-0 input projection for ALL timesteps (one matmul),
    #               written to a ref-backed slab (bounds live range). ----
    xp0_ref[...] = (jnp.dot(x_ref[...].astype(f32), wih0_ref[...],
                            preferred_element_type=f32)
                    + b0_ref[...])            # (S*B, 4H)

    # ---- phase 1: wavefront recurrence — ONE MXU matmul per timestep ----
    h0 = jnp.zeros((B, H), f32)
    c0 = jnp.zeros((B, H), f32)
    h1 = jnp.zeros((B, H), f32)
    c1 = jnp.zeros((B, H), f32)
    rec0 = jnp.zeros((B, 4 * H), f32)         # h0_{t-1} @ Whh0^T contribution
    for t in range(S):                        # S small & static -> fully unrolled
        gates0 = xp0_ref[t * B:(t + 1) * B, :] + rec0
        h0, c0 = cell(gates0, c0)
        z = jnp.concatenate([h0, h1], axis=-1)                 # (B, 2H)
        zz = jnp.dot(z, wcat, preferred_element_type=f32)      # (B, 8H)
        rec0 = zz[:, :4 * H]                  # layer-0 recurrent term for t+1
        gates1 = zz[:, 4 * H:] + b1           # layer-1 gates for step t
        h1, c1 = cell(gates1, c1)
        h1_all[t * B:(t + 1) * B, :] = h1     # VMEM slab; no per-step HBM traffic

    # ---- phase 2: fused Linear(H,1) + ReLU, hoisted out of the loop.
    #               Lane-dense (1, S*B) result, exactly one store. ----
    y = lax.dot_general(fcw_ref[...], h1_all[...],
                        dimension_numbers=(((1,), (1,)), ((), ())),
                        preferred_element_type=f32) + fcb_ref[...]   # (1, S*B)
    out_ref[...] = jnp.maximum(y, 0.0).astype(out_ref.dtype)


# ---------------------------------------------------- one-time param prep
def prepare_params(params):
    """Host/one-time preprocessing: transposes, bias sums, wavefront W_cat."""
    l0, l1 = params["lstm"]
    H = l0["w_hh"].shape[1]

    wih0 = jnp.asarray(l0["w_ih"]).T                       # (I, 4H)
    b0 = (l0["b_ih"] + l0["b_hh"]).reshape(1, 4 * H)
    whh0t = jnp.asarray(l0["w_hh"]).T                      # (H, 4H)
    wih1t = jnp.asarray(l1["w_ih"]).T                      # (H, 4H)
    whh1t = jnp.asarray(l1["w_hh"]).T                      # (H, 4H)
    # W_cat = [[Whh0^T, Wih1^T], [0, Whh1^T]]  -> (2H, 8H)
    wcat = jnp.concatenate(
        [jnp.concatenate([whh0t, wih1t], axis=1),
         jnp.concatenate([jnp.zeros_like(whh1t), whh1t], axis=1)],
        axis=0)
    b1 = (l1["b_ih"] + l1["b_hh"]).reshape(1, 4 * H)
    fcw = jnp.asarray(params["fc_w"]).reshape(1, H)        # (1, H)
    fcb = jnp.asarray(params["fc_b"]).reshape(1, 1)        # (1, 1)
    return {"wih0": wih0, "b0": b0, "wcat": wcat, "b1": b1,
            "fcw": fcw, "fcb": fcb, "hidden": H}


# -------------------------------------------------------------- full forward
def rnn_forward(x, prep):
    """x: (S, B, I) -> (S, B) after LSTM(2 layers) + Linear(H,1) + squeeze + ReLU."""
    S, B, I = x.shape
    H = prep["hidden"]

    # Pad batch to a multiple of 8 sublanes (padded rows are independent;
    # sliced off after the kernel).
    Bp = ((B + 7) // 8) * 8
    x_pad = jnp.pad(x, ((0, 0), (0, Bp - B), (0, 0)))
    x2d = x_pad.reshape(S * Bp, I)

    vmem = pl.BlockSpec(memory_space=pltpu.MemorySpace.VMEM)
    y = pl.pallas_call(
        functools.partial(fused_rnn_kernel, seq_len=S, batch=Bp, hidden=H),
        out_shape=jax.ShapeDtypeStruct((1, S * Bp), x.dtype),   # lane-dense row
        in_specs=[vmem] * 7,
        out_specs=vmem,
        scratch_shapes=[pltpu.VMEM((S * Bp, 4 * H), jnp.float32),  # xproj0 slab
                        pltpu.VMEM((S * Bp, H), jnp.float32)],     # layer-1 h slab
    )(x2d, prep["wih0"], prep["b0"], prep["wcat"], prep["b1"],
      prep["fcw"], prep["fcb"])

    # squeeze + drop padded batch rows; ReLU already applied inside the kernel.
    return y.reshape(S, Bp)[:, :B]


# ---------------------------------------------------------------- pure-JAX ref
def lstm_layer_ref(x, w_ih, w_hh, b_ih, b_hh):
    S, B, I = x.shape
    H = w_hh.shape[1]

    def step(carry, x_t):
        h, c = carry
        gates = x_t @ w_ih.T + h @ w_hh.T + b_ih + b_hh
        i = jax.nn.sigmoid(gates[:, 0 * H:1 * H])
        f = jax.nn.sigmoid(gates[:, 1 * H:2 * H])
        g = jnp.tanh(gates[:, 2 * H:3 * H])
        o = jax.nn.sigmoid(gates[:, 3 * H:4 * H])
        c = f * c + i * g
        h = o * jnp.tanh(c)
        return (h, c), h

    init = (jnp.zeros((B, H), x.dtype), jnp.zeros((B, H), x.dtype))
    _, hs = lax.scan(step, init, x)
    return hs


def rnn_forward_ref(x, params):
    h = x
    for layer in params["lstm"]:
        h = lstm_layer_ref(h, layer["w_ih"], layer["w_hh"],
                           layer["b_ih"], layer["b_hh"])
    y = h @ params["fc_w"].T + params["fc_b"]              # (S, B, 1)
    return jnp.maximum(y[..., 0], 0.0)                     # squeeze + ReLU


# --------------------------------------------------------------------- params
def init_params(key, input_size, hidden_size, num_layers):
    k = 1.0 / np.sqrt(hidden_size)
    params = {"lstm": []}
    in_sz = input_size
    for _ in range(num_layers):
        key, k1, k2, k3, k4 = jax.random.split(key, 5)
        params["lstm"].append({
            "w_ih": jax.random.uniform(k1, (4 * hidden_size, in_sz),
                                       jnp.float32, -k, k),
            "w_hh": jax.random.uniform(k2, (4 * hidden_size, hidden_size),
                                       jnp.float32, -k, k),
            "b_ih": jax.random.uniform(k3, (4 * hidden_size,),
                                       jnp.float32, -k, k),
            "b_hh": jax.random.uniform(k4, (4 * hidden_size,),
                                       jnp.float32, -k, k),
        })
        in_sz = hidden_size
    key, k1, k2 = jax.random.split(key, 3)
    kf = 1.0 / np.sqrt(hidden_size)
    params["fc_w"] = jax.random.uniform(k1, (1, hidden_size), jnp.float32, -kf, kf)
    params["fc_b"] = jax.random.uniform(k2, (1,), jnp.float32, -kf, kf)
    return params


if __name__ == "__main__":
    SEQ, BATCH, INPUT, HIDDEN, LAYERS = 8, 2, 4, 32, 2

    key = jax.random.PRNGKey(0)
    key, kx, kp = jax.random.split(key, 3)
    x = jax.random.normal(kx, (SEQ, BATCH, INPUT), jnp.float32)
    params = init_params(kp, INPUT, HIDDEN, LAYERS)

    prep = prepare_params(params)          # one-time weight preprocessing
    out = rnn_forward(x, prep)
    out = jax.block_until_ready(out)

    ref = jax.block_until_ready(rnn_forward_ref(x, params))
    np.testing.assert_allclose(np.asarray(out), np.asarray(ref),
                               rtol=2e-5, atol=2e-5)
    assert out.shape == (SEQ, BATCH)
    print("KERNEL_OK")
</pallas_src>

<mosaic_0001>
module attributes {stable_mosaic.version = 11 : i64} {
  func.func @fused_rnn_kernel(%arg0: memref<64x4xf32, #tpu.memory_space<vmem>>, %arg1: memref<4x128xf32, #tpu.memory_space<vmem>>, %arg2: memref<1x128xf32, #tpu.memory_space<vmem>>, %arg3: memref<64x256xf32, #tpu.memory_space<vmem>>, %arg4: memref<1x128xf32, #tpu.memory_space<vmem>>, %arg5: memref<1x32xf32, #tpu.memory_space<vmem>>, %arg6: memref<1x1xf32, #tpu.memory_space<vmem>>, %arg7: memref<1x64xf32, #tpu.memory_space<vmem>>, %arg8: memref<64x128xf32, #tpu.memory_space<vmem>>, %arg9: memref<64x32xf32, #tpu.memory_space<vmem>>) attributes {dimension_semantics = [], scalar_prefetch = 0 : i64, scratch_operands = 2 : i64, tpu.core_type = #tpu.core_type<tc>} {
    %c0 = arith.constant 0 : index
    %c0_0 = arith.constant 0 : index
    %0 = vector.load %arg3[%c0, %c0_0] : memref<64x256xf32, #tpu.memory_space<vmem>>, vector<64x256xf32>
    %c0_1 = arith.constant 0 : index
    %c0_2 = arith.constant 0 : index
    %1 = vector.load %arg4[%c0_1, %c0_2] : memref<1x128xf32, #tpu.memory_space<vmem>>, vector<1x128xf32>
    %c0_3 = arith.constant 0 : index
    %c0_4 = arith.constant 0 : index
    %2 = vector.load %arg0[%c0_3, %c0_4] : memref<64x4xf32, #tpu.memory_space<vmem>>, vector<64x4xf32>
    %c0_5 = arith.constant 0 : index
    %c0_6 = arith.constant 0 : index
    %3 = vector.load %arg1[%c0_5, %c0_6] : memref<4x128xf32, #tpu.memory_space<vmem>>, vector<4x128xf32>
    %cst = arith.constant dense<0.000000e+00> : vector<64x128xf32>
    %4 = tpu.matmul %2, %3, %cst {dimension_numbers = #tpu.dot_dimension_numbers<[1], [0], [0], [1], [0, 0, 1, 1], [], []>} : vector<64x4xf32>, vector<4x128xf32>, vector<64x128xf32> -> vector<64x128xf32>
    %c0_7 = arith.constant 0 : index
    %c0_8 = arith.constant 0 : index
    %5 = vector.load %arg2[%c0_7, %c0_8] : memref<1x128xf32, #tpu.memory_space<vmem>>, vector<1x128xf32>
    %6 = vector.broadcast %5 : vector<1x128xf32> to vector<64x128xf32>
    %7 = arith.addf %4, %6 : vector<64x128xf32>
    %c0_9 = arith.constant 0 : index
    %c0_10 = arith.constant 0 : index
    %8 = vector.load %arg8[%c0_9, %c0_10] : memref<64x128xf32, #tpu.memory_space<vmem>>, vector<64x128xf32>
    tpu.vector_store %arg8[%c0_9, %c0_10], %7 {strides = array<i32>} : memref<64x128xf32, #tpu.memory_space<vmem>>, vector<64x128xf32>,
    %cst_11 = arith.constant 0.000000e+00 : f32
    %9 = vector.broadcast %cst_11 : f32 to vector<8x32xf32>
    %cst_12 = arith.constant 0.000000e+00 : f32
    %10 = vector.broadcast %cst_12 : f32 to vector<8x32xf32>
    %cst_13 = arith.constant 0.000000e+00 : f32
    %11 = vector.broadcast %cst_13 : f32 to vector<8x32xf32>
    %cst_14 = arith.constant 0.000000e+00 : f32
    %12 = vector.broadcast %cst_14 : f32 to vector<8x128xf32>
    %c0_15 = arith.constant 0 : index
    %c0_16 = arith.constant 0 : index
    %13 = vector.load %arg8[%c0_15, %c0_16] : memref<64x128xf32, #tpu.memory_space<vmem>>, vector<8x128xf32>
    %14 = arith.addf %13, %12 : vector<8x128xf32>
    %15 = arith.negf %14 : vector<8x128xf32>
    %16 = math.exp %15 : vector<8x128xf32>
    %cst_17 = arith.constant 1.000000e+00 : f32
    %17 = vector.broadcast %cst_17 : f32 to vector<8x128xf32>
    %18 = arith.addf %17, %16 : vector<8x128xf32>
    %19 = arith.divf %17, %18 : vector<8x128xf32>
    %20 = math.tanh %14 : vector<8x128xf32>
    %21 = vector.extract_strided_slice %19 {offsets = [0, 0], sizes = [8, 32], strides = [1, 1]} : vector<8x128xf32> to vector<8x32xf32>
    %22 = vector.extract_strided_slice %19 {offsets = [0, 32], sizes = [8, 32], strides = [1, 1]} : vector<8x128xf32> to vector<8x32xf32>
    %23 = vector.extract_strided_slice %20 {offsets = [0, 64], sizes = [8, 32], strides = [1, 1]} : vector<8x128xf32> to vector<8x32xf32>
    %24 = vector.extract_strided_slice %19 {offsets = [0, 96], sizes = [8, 32], strides = [1, 1]} : vector<8x128xf32> to vector<8x32xf32>
    %25 = arith.mulf %22, %9 : vector<8x32xf32>
    %26 = arith.mulf %21, %23 : vector<8x32xf32>
    %27 = arith.addf %25, %26 : vector<8x32xf32>
    %28 = math.tanh %27 : vector<8x32xf32>
    %29 = arith.mulf %24, %28 : vector<8x32xf32>
    %30 = tpu.concatenate %29, %10 in 1 : vector<8x32xf32>, vector<8x32xf32> -> vector<8x64xf32>
    %cst_18 = arith.constant dense<0.000000e+00> : vector<8x256xf32>
    %31 = tpu.matmul %30, %0, %cst_18 {dimension_numbers = #tpu.dot_dimension_numbers<[1], [0], [0], [1], [0, 0, 1, 1], [], []>} : vector<8x64xf32>, vector<64x256xf32>, vector<8x256xf32> -> vector<8x256xf32>
    %32 = vector.extract_strided_slice %31 {offsets = [0, 0], sizes = [8, 128], strides = [1, 1]} : vector<8x256xf32> to vector<8x128xf32>
    %33 = vector.extract_strided_slice %31 {offsets = [0, 128], sizes = [8, 128], strides = [1, 1]} : vector<8x256xf32> to vector<8x128xf32>
    %34 = vector.broadcast %1 : vector<1x128xf32> to vector<8x128xf32>
    %35 = arith.addf %33, %34 : vector<8x128xf32>
    %36 = arith.negf %35 : vector<8x128xf32>
    %37 = math.exp %36 : vector<8x128xf32>
    %cst_19 = arith.constant 1.000000e+00 : f32
    %38 = vector.broadcast %cst_19 : f32 to vector<8x128xf32>
    %39 = arith.addf %38, %37 : vector<8x128xf32>
    %40 = arith.divf %38, %39 : vector<8x128xf32>
    %41 = math.tanh %35 : vector<8x128xf32>
    %42 = vector.extract_strided_slice %40 {offsets = [0, 0], sizes = [8, 32], strides = [1, 1]} : vector<8x128xf32> to vector<8x32xf32>
    %43 = vector.extract_strided_slice %40 {offsets = [0, 32], sizes = [8, 32], strides = [1, 1]} : vector<8x128xf32> to vector<8x32xf32>
    %44 = vector.extract_strided_slice %41 {offsets = [0, 64], sizes = [8, 32], strides = [1, 1]} : vector<8x128xf32> to vector<8x32xf32>
    %45 = vector.extract_strided_slice %40 {offsets = [0, 96], sizes = [8, 32], strides = [1, 1]} : vector<8x128xf32> to vector<8x32xf32>
    %46 = arith.mulf %43, %11 : vector<8x32xf32>
    %47 = arith.mulf %42, %44 : vector<8x32xf32>
    %48 = arith.addf %46, %47 : vector<8x32xf32>
    %49 = math.tanh %48 : vector<8x32xf32>
    %50 = arith.mulf %45, %49 : vector<8x32xf32>
    %c0_20 = arith.constant 0 : index
    %c0_21 = arith.constant 0 : index
    %51 = vector.load %arg9[%c0_20, %c0_21] : memref<64x32xf32, #tpu.memory_space<vmem>>, vector<8x32xf32>
    tpu.vector_store %arg9[%c0_20, %c0_21], %50 {strides = array<i32>} : memref<64x32xf32, #tpu.memory_space<vmem>>, vector<8x32xf32>,
    %c8 = arith.constant 8 : index
    %c0_22 = arith.constant 0 : index
    %52 = vector.load %arg8[%c8, %c0_22] : memref<64x128xf32, #tpu.memory_space<vmem>>, vector<8x128xf32>
    %53 = arith.addf %52, %32 : vector<8x128xf32>
    %54 = arith.negf %53 : vector<8x128xf32>
    %55 = math.exp %54 : vector<8x128xf32>
    %cst_23 = arith.constant 1.000000e+00 : f32
    %56 = vector.broadcast %cst_23 : f32 to vector<8x128xf32>
    %57 = arith.addf %56, %55 : vector<8x128xf32>
    %58 = arith.divf %56, %57 : vector<8x128xf32>
    %59 = math.tanh %53 : vector<8x128xf32>
    %60 = vector.extract_strided_slice %58 {offsets = [0, 0], sizes = [8, 32], strides = [1, 1]} : vector<8x128xf32> to vector<8x32xf32>
    %61 = vector.extract_strided_slice %58 {offsets = [0, 32], sizes = [8, 32], strides = [1, 1]} : vector<8x128xf32> to vector<8x32xf32>
    %62 = vector.extract_strided_slice %59 {offsets = [0, 64], sizes = [8, 32], strides = [1, 1]} : vector<8x128xf32> to vector<8x32xf32>
    %63 = vector.extract_strided_slice %58 {offsets = [0, 96], sizes = [8, 32], strides = [1, 1]} : vector<8x128xf32> to vector<8x32xf32>
    %64 = arith.mulf %61, %27 : vector<8x32xf32>
    %65 = arith.mulf %60, %62 : vector<8x32xf32>
    %66 = arith.addf %64, %65 : vector<8x32xf32>
    %67 = math.tanh %66 : vector<8x32xf32>
    %68 = arith.mulf %63, %67 : vector<8x32xf32>
    %69 = tpu.concatenate %68, %50 in 1 : vector<8x32xf32>, vector<8x32xf32> -> vector<8x64xf32>
    %cst_24 = arith.constant dense<0.000000e+00> : vector<8x256xf32>
    %70 = tpu.matmul %69, %0, %cst_24 {dimension_numbers = #tpu.dot_dimension_numbers<[1], [0], [0], [1], [0, 0, 1, 1], [], []>} : vector<8x64xf32>, vector<64x256xf32>, vector<8x256xf32> -> vector<8x256xf32>
    %71 = vector.extract_strided_slice %70 {offsets = [0, 0], sizes = [8, 128], strides = [1, 1]} : vector<8x256xf32> to vector<8x128xf32>
    %72 = vector.extract_strided_slice %70 {offsets = [0, 128], sizes = [8, 128], strides = [1, 1]} : vector<8x256xf32> to vector<8x128xf32>
    %73 = vector.broadcast %1 : vector<1x128xf32> to vector<8x128xf32>
    %74 = arith.addf %72, %73 : vector<8x128xf32>
    %75 = arith.negf %74 : vector<8x128xf32>
    %76 = math.exp %75 : vector<8x128xf32>
    %cst_25 = arith.constant 1.000000e+00 : f32
    %77 = vector.broadcast %cst_25 : f32 to vector<8x128xf32>
    %78 = arith.addf %77, %76 : vector<8x128xf32>
    %79 = arith.divf %77, %78 : vector<8x128xf32>
    %80 = math.tanh %74 : vector<8x128xf32>
    %81 = vector.extract_strided_slice %79 {offsets = [0, 0], sizes = [8, 32], strides = [1, 1]} : vector<8x128xf32> to vector<8x32xf32>
    %82 = vector.extract_strided_slice %79 {offsets = [0, 32], sizes = [8, 32], strides = [1, 1]} : vector<8x128xf32> to vector<8x32xf32>
    %83 = vector.extract_strided_slice %80 {offsets = [0, 64], sizes = [8, 32], strides = [1, 1]} : vector<8x128xf32> to vector<8x32xf32>
    %84 = vector.extract_strided_slice %79 {offsets = [0, 96], sizes = [8, 32], strides = [1, 1]} : vector<8x128xf32> to vector<8x32xf32>
    %85 = arith.mulf %82, %48 : vector<8x32xf32>
    %86 = arith.mulf %81, %83 : vector<8x32xf32>
    %87 = arith.addf %85, %86 : vector<8x32xf32>
    %88 = math.tanh %87 : vector<8x32xf32>
    %89 = arith.mulf %84, %88 : vector<8x32xf32>
    %c8_26 = arith.constant 8 : index
    %c0_27 = arith.constant 0 : index
    %90 = vector.load %arg9[%c8_26, %c0_27] : memref<64x32xf32, #tpu.memory_space<vmem>>, vector<8x32xf32>
    tpu.vector_store %arg9[%c8_26, %c0_27], %89 {strides = array<i32>} : memref<64x32xf32, #tpu.memory_space<vmem>>, vector<8x32xf32>,
    %c16 = arith.constant 16 : index
    %c0_28 = arith.constant 0 : index
    %91 = vector.load %arg8[%c16, %c0_28] : memref<64x128xf32, #tpu.memory_space<vmem>>, vector<8x128xf32>
    %92 = arith.addf %91, %71 : vector<8x128xf32>
    %93 = arith.negf %92 : vector<8x128xf32>
    %94 = math.exp %93 : vector<8x128xf32>
    %cst_29 = arith.constant 1.000000e+00 : f32
    %95 = vector.broadcast %cst_29 : f32 to vector<8x128xf32>
    %96 = arith.addf %95, %94 : vector<8x128xf32>
    %97 = arith.divf %95, %96 : vector<8x128xf32>
    %98 = math.tanh %92 : vector<8x128xf32>
    %99 = vector.extract_strided_slice %97 {offsets = [0, 0], sizes = [8, 32], strides = [1, 1]} : vector<8x128xf32> to vector<8x32xf32>
    %100 = vector.extract_strided_slice %97 {offsets = [0, 32], sizes = [8, 32], strides = [1, 1]} : vector<8x128xf32> to vector<8x32xf32>
    %101 = vector.extract_strided_slice %98 {offsets = [0, 64], sizes = [8, 32], strides = [1, 1]} : vector<8x128xf32> to vector<8x32xf32>
    %102 = vector.extract_strided_slice %97 {offsets = [0, 96], sizes = [8, 32], strides = [1, 1]} : vector<8x128xf32> to vector<8x32xf32>
    %103 = arith.mulf %100, %66 : vector<8x32xf32>
    %104 = arith.mulf %99, %101 : vector<8x32xf32>
    %105 = arith.addf %103, %104 : vector<8x32xf32>
    %106 = math.tanh %105 : vector<8x32xf32>
    %107 = arith.mulf %102, %106 : vector<8x32xf32>
    %108 = tpu.concatenate %107, %89 in 1 : vector<8x32xf32>, vector<8x32xf32> -> vector<8x64xf32>
    %cst_30 = arith.constant dense<0.000000e+00> : vector<8x256xf32>
    %109 = tpu.matmul %108, %0, %cst_30 {dimension_numbers = #tpu.dot_dimension_numbers<[1], [0], [0], [1], [0, 0, 1, 1], [], []>} : vector<8x64xf32>, vector<64x256xf32>, vector<8x256xf32> -> vector<8x256xf32>
    %110 = vector.extract_strided_slice %109 {offsets = [0, 0], sizes = [8, 128], strides = [1, 1]} : vector<8x256xf32> to vector<8x128xf32>
    %111 = vector.extract_strided_slice %109 {offsets = [0, 128], sizes = [8, 128], strides = [1, 1]} : vector<8x256xf32> to vector<8x128xf32>
    %112 = vector.broadcast %1 : vector<1x128xf32> to vector<8x128xf32>
    %113 = arith.addf %111, %112 : vector<8x128xf32>
    %114 = arith.negf %113 : vector<8x128xf32>
    %115 = math.exp %114 : vector<8x128xf32>
    %cst_31 = arith.constant 1.000000e+00 : f32
    %116 = vector.broadcast %cst_31 : f32 to vector<8x128xf32>
    %117 = arith.addf %116, %115 : vector<8x128xf32>
    %118 = arith.divf %116, %117 : vector<8x128xf32>
    %119 = math.tanh %113 : vector<8x128xf32>
    %120 = vector.extract_strided_slice %118 {offsets = [0, 0], sizes = [8, 32], strides = [1, 1]} : vector<8x128xf32> to vector<8x32xf32>
    %121 = vector.extract_strided_slice %118 {offsets = [0, 32], sizes = [8, 32], strides = [1, 1]} : vector<8x128xf32> to vector<8x32xf32>
    %122 = vector.extract_strided_slice %119 {offsets = [0, 64], sizes = [8, 32], strides = [1, 1]} : vector<8x128xf32> to vector<8x32xf32>
    %123 = vector.extract_strided_slice %118 {offsets = [0, 96], sizes = [8, 32], strides = [1, 1]} : vector<8x128xf32> to vector<8x32xf32>
    %124 = arith.mulf %121, %87 : vector<8x32xf32>
    %125 = arith.mulf %120, %122 : vector<8x32xf32>
    %126 = arith.addf %124, %125 : vector<8x32xf32>
    %127 = math.tanh %126 : vector<8x32xf32>
    %128 = arith.mulf %123, %127 : vector<8x32xf32>
    %c16_32 = arith.constant 16 : index
    %c0_33 = arith.constant 0 : index
    %129 = vector.load %arg9[%c16_32, %c0_33] : memref<64x32xf32, #tpu.memory_space<vmem>>, vector<8x32xf32>
    tpu.vector_store %arg9[%c16_32, %c0_33], %128 {strides = array<i32>} : memref<64x32xf32, #tpu.memory_space<vmem>>, vector<8x32xf32>,
    %c24 = arith.constant 24 : index
    %c0_34 = arith.constant 0 : index
    %130 = vector.load %arg8[%c24, %c0_34] : memref<64x128xf32, #tpu.memory_space<vmem>>, vector<8x128xf32>
    %131 = arith.addf %130, %110 : vector<8x128xf32>
    %132 = arith.negf %131 : vector<8x128xf32>
    %133 = math.exp %132 : vector<8x128xf32>
    %cst_35 = arith.constant 1.000000e+00 : f32
    %134 = vector.broadcast %cst_35 : f32 to vector<8x128xf32>
    %135 = arith.addf %134, %133 : vector<8x128xf32>
    %136 = arith.divf %134, %135 : vector<8x128xf32>
    %137 = math.tanh %131 : vector<8x128xf32>
    %138 = vector.extract_strided_slice %136 {offsets = [0, 0], sizes = [8, 32], strides = [1, 1]} : vector<8x128xf32> to vector<8x32xf32>
    %139 = vector.extract_strided_slice %136 {offsets = [0, 32], sizes = [8, 32], strides = [1, 1]} : vector<8x128xf32> to vector<8x32xf32>
    %140 = vector.extract_strided_slice %137 {offsets = [0, 64], sizes = [8, 32], strides = [1, 1]} : vector<8x128xf32> to vector<8x32xf32>
    %141 = vector.extract_strided_slice %136 {offsets = [0, 96], sizes = [8, 32], strides = [1, 1]} : vector<8x128xf32> to vector<8x32xf32>
    %142 = arith.mulf %139, %105 : vector<8x32xf32>
    %143 = arith.mulf %138, %140 : vector<8x32xf32>
    %144 = arith.addf %142, %143 : vector<8x32xf32>
    %145 = math.tanh %144 : vector<8x32xf32>
    %146 = arith.mulf %141, %145 : vector<8x32xf32>
    %147 = tpu.concatenate %146, %128 in 1 : vector<8x32xf32>, vector<8x32xf32> -> vector<8x64xf32>
    %cst_36 = arith.constant dense<0.000000e+00> : vector<8x256xf32>
    %148 = tpu.matmul %147, %0, %cst_36 {dimension_numbers = #tpu.dot_dimension_numbers<[1], [0], [0], [1], [0, 0, 1, 1], [], []>} : vector<8x64xf32>, vector<64x256xf32>, vector<8x256xf32> -> vector<8x256xf32>
    %149 = vector.extract_strided_slice %148 {offsets = [0, 0], sizes = [8, 128], strides = [1, 1]} : vector<8x256xf32> to vector<8x128xf32>
    %150 = vector.extract_strided_slice %148 {offsets = [0, 128], sizes = [8, 128], strides = [1, 1]} : vector<8x256xf32> to vector<8x128xf32>
    %151 = vector.broadcast %1 : vector<1x128xf32> to vector<8x128xf32>
    %152 = arith.addf %150, %151 : vector<8x128xf32>
    %153 = arith.negf %152 : vector<8x128xf32>
    %154 = math.exp %153 : vector<8x128xf32>
    %cst_37 = arith.constant 1.000000e+00 : f32
    %155 = vector.broadcast %cst_37 : f32 to vector<8x128xf32>
    %156 = arith.addf %155, %154 : vector<8x128xf32>
    %157 = arith.divf %155, %156 : vector<8x128xf32>
    %158 = math.tanh %152 : vector<8x128xf32>
    %159 = vector.extract_strided_slice %157 {offsets = [0, 0], sizes = [8, 32], strides = [1, 1]} : vector<8x128xf32> to vector<8x32xf32>
    %160 = vector.extract_strided_slice %157 {offsets = [0, 32], sizes = [8, 32], strides = [1, 1]} : vector<8x128xf32> to vector<8x32xf32>
    %161 = vector.extract_strided_slice %158 {offsets = [0, 64], sizes = [8, 32], strides = [1, 1]} : vector<8x128xf32> to vector<8x32xf32>
    %162 = vector.extract_strided_slice %157 {offsets = [0, 96], sizes = [8, 32], strides = [1, 1]} : vector<8x128xf32> to vector<8x32xf32>
    %163 = arith.mulf %160, %126 : vector<8x32xf32>
    %164 = arith.mulf %159, %161 : vector<8x32xf32>
    %165 = arith.addf %163, %164 : vector<8x32xf32>
    %166 = math.tanh %165 : vector<8x32xf32>
    %167 = arith.mulf %162, %166 : vector<8x32xf32>
    %c24_38 = arith.constant 24 : index
    %c0_39 = arith.constant 0 : index
    %168 = vector.load %arg9[%c24_38, %c0_39] : memref<64x32xf32, #tpu.memory_space<vmem>>, vector<8x32xf32>
    tpu.vector_store %arg9[%c24_38, %c0_39], %167 {strides = array<i32>} : memref<64x32xf32, #tpu.memory_space<vmem>>, vector<8x32xf32>,
    %c32 = arith.constant 32 : index
    %c0_40 = arith.constant 0 : index
    %169 = vector.load %arg8[%c32, %c0_40] : memref<64x128xf32, #tpu.memory_space<vmem>>, vector<8x128xf32>
    %170 = arith.addf %169, %149 : vector<8x128xf32>
    %171 = arith.negf %170 : vector<8x128xf32>
    %172 = math.exp %171 : vector<8x128xf32>
    %cst_41 = arith.constant 1.000000e+00 : f32
    %173 = vector.broadcast %cst_41 : f32 to vector<8x128xf32>
    %174 = arith.addf %173, %172 : vector<8x128xf32>
    %175 = arith.divf %173, %174 : vector<8x128xf32>
    %176 = math.tanh %170 : vector<8x128xf32>
    %177 = vector.extract_strided_slice %175 {offsets = [0, 0], sizes = [8, 32], strides = [1, 1]} : vector<8x128xf32> to vector<8x32xf32>
    %178 = vector.extract_strided_slice %175 {offsets = [0, 32], sizes = [8, 32], strides = [1, 1]} : vector<8x128xf32> to vector<8x32xf32>
    %179 = vector.extract_strided_slice %176 {offsets = [0, 64], sizes = [8, 32], strides = [1, 1]} : vector<8x128xf32> to vector<8x32xf32>
    %180 = vector.extract_strided_slice %175 {offsets = [0, 96], sizes = [8, 32], strides = [1, 1]} : vector<8x128xf32> to vector<8x32xf32>
    %181 = arith.mulf %178, %144 : vector<8x32xf32>
    %182 = arith.mulf %177, %179 : vector<8x32xf32>
    %183 = arith.addf %181, %182 : vector<8x32xf32>
    %184 = math.tanh %183 : vector<8x32xf32>
    %185 = arith.mulf %180, %184 : vector<8x32xf32>
    %186 = tpu.concatenate %185, %167 in 1 : vector<8x32xf32>, vector<8x32xf32> -> vector<8x64xf32>
    %cst_42 = arith.constant dense<0.000000e+00> : vector<8x256xf32>
    %187 = tpu.matmul %186, %0, %cst_42 {dimension_numbers = #tpu.dot_dimension_numbers<[1], [0], [0], [1], [0, 0, 1, 1], [], []>} : vector<8x64xf32>, vector<64x256xf32>, vector<8x256xf32> -> vector<8x256xf32>
    %188 = vector.extract_strided_slice %187 {offsets = [0, 0], sizes = [8, 128], strides = [1, 1]} : vector<8x256xf32> to vector<8x128xf32>
    %189 = vector.extract_strided_slice %187 {offsets = [0, 128], sizes = [8, 128], strides = [1, 1]} : vector<8x256xf32> to vector<8x128xf32>
    %190 = vector.broadcast %1 : vector<1x128xf32> to vector<8x128xf32>
    %191 = arith.addf %189, %190 : vector<8x128xf32>
    %192 = arith.negf %191 : vector<8x128xf32>
    %193 = math.exp %192 : vector<8x128xf32>
    %cst_43 = arith.constant 1.000000e+00 : f32
    %194 = vector.broadcast %cst_43 : f32 to vector<8x128xf32>
    %195 = arith.addf %194, %193 : vector<8x128xf32>
    %196 = arith.divf %194, %195 : vector<8x128xf32>
    %197 = math.tanh %191 : vector<8x128xf32>
    %198 = vector.extract_strided_slice %196 {offsets = [0, 0], sizes = [8, 32], strides = [1, 1]} : vector<8x128xf32> to vector<8x32xf32>
    %199 = vector.extract_strided_slice %196 {offsets = [0, 32], sizes = [8, 32], strides = [1, 1]} : vector<8x128xf32> to vector<8x32xf32>
    %200 = vector.extract_strided_slice %197 {offsets = [0, 64], sizes = [8, 32], strides = [1, 1]} : vector<8x128xf32> to vector<8x32xf32>
    %201 = vector.extract_strided_slice %196 {offsets = [0, 96], sizes = [8, 32], strides = [1, 1]} : vector<8x128xf32> to vector<8x32xf32>
    %202 = arith.mulf %199, %165 : vector<8x32xf32>
    %203 = arith.mulf %198, %200 : vector<8x32xf32>
    %204 = arith.addf %202, %203 : vector<8x32xf32>
    %205 = math.tanh %204 : vector<8x32xf32>
    %206 = arith.mulf %201, %205 : vector<8x32xf32>
    %c32_44 = arith.constant 32 : index
    %c0_45 = arith.constant 0 : index
    %207 = vector.load %arg9[%c32_44, %c0_45] : memref<64x32xf32, #tpu.memory_space<vmem>>, vector<8x32xf32>
    tpu.vector_store %arg9[%c32_44, %c0_45], %206 {strides = array<i32>} : memref<64x32xf32, #tpu.memory_space<vmem>>, vector<8x32xf32>,
    %c40 = arith.constant 40 : index
    %c0_46 = arith.constant 0 : index
    %208 = vector.load %arg8[%c40, %c0_46] : memref<64x128xf32, #tpu.memory_space<vmem>>, vector<8x128xf32>
    %209 = arith.addf %208, %188 : vector<8x128xf32>
    %210 = arith.negf %209 : vector<8x128xf32>
    %211 = math.exp %210 : vector<8x128xf32>
    %cst_47 = arith.constant 1.000000e+00 : f32
    %212 = vector.broadcast %cst_47 : f32 to vector<8x128xf32>
    %213 = arith.addf %212, %211 : vector<8x128xf32>
    %214 = arith.divf %212, %213 : vector<8x128xf32>
    %215 = math.tanh %209 : vector<8x128xf32>
    %216 = vector.extract_strided_slice %214 {offsets = [0, 0], sizes = [8, 32], strides = [1, 1]} : vector<8x128xf32> to vector<8x32xf32>
    %217 = vector.extract_strided_slice %214 {offsets = [0, 32], sizes = [8, 32], strides = [1, 1]} : vector<8x128xf32> to vector<8x32xf32>
    %218 = vector.extract_strided_slice %215 {offsets = [0, 64], sizes = [8, 32], strides = [1, 1]} : vector<8x128xf32> to vector<8x32xf32>
    %219 = vector.extract_strided_slice %214 {offsets = [0, 96], sizes = [8, 32], strides = [1, 1]} : vector<8x128xf32> to vector<8x32xf32>
    %220 = arith.mulf %217, %183 : vector<8x32xf32>
    %221 = arith.mulf %216, %218 : vector<8x32xf32>
    %222 = arith.addf %220, %221 : vector<8x32xf32>
    %223 = math.tanh %222 : vector<8x32xf32>
    %224 = arith.mulf %219, %223 : vector<8x32xf32>
    %225 = tpu.concatenate %224, %206 in 1 : vector<8x32xf32>, vector<8x32xf32> -> vector<8x64xf32>
    %cst_48 = arith.constant dense<0.000000e+00> : vector<8x256xf32>
    %226 = tpu.matmul %225, %0, %cst_48 {dimension_numbers = #tpu.dot_dimension_numbers<[1], [0], [0], [1], [0, 0, 1, 1], [], []>} : vector<8x64xf32>, vector<64x256xf32>, vector<8x256xf32> -> vector<8x256xf32>
    %227 = vector.extract_strided_slice %226 {offsets = [0, 0], sizes = [8, 128], strides = [1, 1]} : vector<8x256xf32> to vector<8x128xf32>
    %228 = vector.extract_strided_slice %226 {offsets = [0, 128], sizes = [8, 128], strides = [1, 1]} : vector<8x256xf32> to vector<8x128xf32>
    %229 = vector.broadcast %1 : vector<1x128xf32> to vector<8x128xf32>
    %230 = arith.addf %228, %229 : vector<8x128xf32>
    %231 = arith.negf %230 : vector<8x128xf32>
    %232 = math.exp %231 : vector<8x128xf32>
    %cst_49 = arith.constant 1.000000e+00 : f32
    %233 = vector.broadcast %cst_49 : f32 to vector<8x128xf32>
    %234 = arith.addf %233, %232 : vector<8x128xf32>
    %235 = arith.divf %233, %234 : vector<8x128xf32>
    %236 = math.tanh %230 : vector<8x128xf32>
    %237 = vector.extract_strided_slice %235 {offsets = [0, 0], sizes = [8, 32], strides = [1, 1]} : vector<8x128xf32> to vector<8x32xf32>
    %238 = vector.extract_strided_slice %235 {offsets = [0, 32], sizes = [8, 32], strides = [1, 1]} : vector<8x128xf32> to vector<8x32xf32>
    %239 = vector.extract_strided_slice %236 {offsets = [0, 64], sizes = [8, 32], strides = [1, 1]} : vector<8x128xf32> to vector<8x32xf32>
    %240 = vector.extract_strided_slice %235 {offsets = [0, 96], sizes = [8, 32], strides = [1, 1]} : vector<8x128xf32> to vector<8x32xf32>
    %241 = arith.mulf %238, %204 : vector<8x32xf32>
    %242 = arith.mulf %237, %239 : vector<8x32xf32>
    %243 = arith.addf %241, %242 : vector<8x32xf32>
    %244 = math.tanh %243 : vector<8x32xf32>
    %245 = arith.mulf %240, %244 : vector<8x32xf32>
    %c40_50 = arith.constant 40 : index
    %c0_51 = arith.constant 0 : index
    %246 = vector.load %arg9[%c40_50, %c0_51] : memref<64x32xf32, #tpu.memory_space<vmem>>, vector<8x32xf32>
    tpu.vector_store %arg9[%c40_50, %c0_51], %245 {strides = array<i32>} : memref<64x32xf32, #tpu.memory_space<vmem>>, vector<8x32xf32>,
    %c48 = arith.constant 48 : index
    %c0_52 = arith.constant 0 : index
    %247 = vector.load %arg8[%c48, %c0_52] : memref<64x128xf32, #tpu.memory_space<vmem>>, vector<8x128xf32>
    %248 = arith.addf %247, %227 : vector<8x128xf32>
    %249 = arith.negf %248 : vector<8x128xf32>
    %250 = math.exp %249 : vector<8x128xf32>
    %cst_53 = arith.constant 1.000000e+00 : f32
    %251 = vector.broadcast %cst_53 : f32 to vector<8x128xf32>
    %252 = arith.addf %251, %250 : vector<8x128xf32>
    %253 = arith.divf %251, %252 : vector<8x128xf32>
    %254 = math.tanh %248 : vector<8x128xf32>
    %255 = vector.extract_strided_slice %253 {offsets = [0, 0], sizes = [8, 32], strides = [1, 1]} : vector<8x128xf32> to vector<8x32xf32>
    %256 = vector.extract_strided_slice %253 {offsets = [0, 32], sizes = [8, 32], strides = [1, 1]} : vector<8x128xf32> to vector<8x32xf32>
    %257 = vector.extract_strided_slice %254 {offsets = [0, 64], sizes = [8, 32], strides = [1, 1]} : vector<8x128xf32> to vector<8x32xf32>
    %258 = vector.extract_strided_slice %253 {offsets = [0, 96], sizes = [8, 32], strides = [1, 1]} : vector<8x128xf32> to vector<8x32xf32>
    %259 = arith.mulf %256, %222 : vector<8x32xf32>
    %260 = arith.mulf %255, %257 : vector<8x32xf32>
    %261 = arith.addf %259, %260 : vector<8x32xf32>
    %262 = math.tanh %261 : vector<8x32xf32>
    %263 = arith.mulf %258, %262 : vector<8x32xf32>
    %264 = tpu.concatenate %263, %245 in 1 : vector<8x32xf32>, vector<8x32xf32> -> vector<8x64xf32>
    %cst_54 = arith.constant dense<0.000000e+00> : vector<8x256xf32>
    %265 = tpu.matmul %264, %0, %cst_54 {dimension_numbers = #tpu.dot_dimension_numbers<[1], [0], [0], [1], [0, 0, 1, 1], [], []>} : vector<8x64xf32>, vector<64x256xf32>, vector<8x256xf32> -> vector<8x256xf32>
    %266 = vector.extract_strided_slice %265 {offsets = [0, 0], sizes = [8, 128], strides = [1, 1]} : vector<8x256xf32> to vector<8x128xf32>
    %267 = vector.extract_strided_slice %265 {offsets = [0, 128], sizes = [8, 128], strides = [1, 1]} : vector<8x256xf32> to vector<8x128xf32>
    %268 = vector.broadcast %1 : vector<1x128xf32> to vector<8x128xf32>
    %269 = arith.addf %267, %268 : vector<8x128xf32>
    %270 = arith.negf %269 : vector<8x128xf32>
    %271 = math.exp %270 : vector<8x128xf32>
    %cst_55 = arith.constant 1.000000e+00 : f32
    %272 = vector.broadcast %cst_55 : f32 to vector<8x128xf32>
    %273 = arith.addf %272, %271 : vector<8x128xf32>
    %274 = arith.divf %272, %273 : vector<8x128xf32>
    %275 = math.tanh %269 : vector<8x128xf32>
    %276 = vector.extract_strided_slice %274 {offsets = [0, 0], sizes = [8, 32], strides = [1, 1]} : vector<8x128xf32> to vector<8x32xf32>
    %277 = vector.extract_strided_slice %274 {offsets = [0, 32], sizes = [8, 32], strides = [1, 1]} : vector<8x128xf32> to vector<8x32xf32>
    %278 = vector.extract_strided_slice %275 {offsets = [0, 64], sizes = [8, 32], strides = [1, 1]} : vector<8x128xf32> to vector<8x32xf32>
    %279 = vector.extract_strided_slice %274 {offsets = [0, 96], sizes = [8, 32], strides = [1, 1]} : vector<8x128xf32> to vector<8x32xf32>
    %280 = arith.mulf %277, %243 : vector<8x32xf32>
    %281 = arith.mulf %276, %278 : vector<8x32xf32>
    %282 = arith.addf %280, %281 : vector<8x32xf32>
    %283 = math.tanh %282 : vector<8x32xf32>
    %284 = arith.mulf %279, %283 : vector<8x32xf32>
    %c48_56 = arith.constant 48 : index
    %c0_57 = arith.constant 0 : index
    %285 = vector.load %arg9[%c48_56, %c0_57] : memref<64x32xf32, #tpu.memory_space<vmem>>, vector<8x32xf32>
    tpu.vector_store %arg9[%c48_56, %c0_57], %284 {strides = array<i32>} : memref<64x32xf32, #tpu.memory_space<vmem>>, vector<8x32xf32>,
    %c56 = arith.constant 56 : index
    %c0_58 = arith.constant 0 : index
    %286 = vector.load %arg8[%c56, %c0_58] : memref<64x128xf32, #tpu.memory_space<vmem>>, vector<8x128xf32>
    %287 = arith.addf %286, %266 : vector<8x128xf32>
    %288 = arith.negf %287 : vector<8x128xf32>
    %289 = math.exp %288 : vector<8x128xf32>
    %cst_59 = arith.constant 1.000000e+00 : f32
    %290 = vector.broadcast %cst_59 : f32 to vector<8x128xf32>
    %291 = arith.addf %290, %289 : vector<8x128xf32>
    %292 = arith.divf %290, %291 : vector<8x128xf32>
    %293 = math.tanh %287 : vector<8x128xf32>
    %294 = vector.extract_strided_slice %292 {offsets = [0, 0], sizes = [8, 32], strides = [1, 1]} : vector<8x128xf32> to vector<8x32xf32>
    %295 = vector.extract_strided_slice %292 {offsets = [0, 32], sizes = [8, 32], strides = [1, 1]} : vector<8x128xf32> to vector<8x32xf32>
    %296 = vector.extract_strided_slice %293 {offsets = [0, 64], sizes = [8, 32], strides = [1, 1]} : vector<8x128xf32> to vector<8x32xf32>
    %297 = vector.extract_strided_slice %292 {offsets = [0, 96], sizes = [8, 32], strides = [1, 1]} : vector<8x128xf32> to vector<8x32xf32>
    %298 = arith.mulf %295, %261 : vector<8x32xf32>
    %299 = arith.mulf %294, %296 : vector<8x32xf32>
    %300 = arith.addf %298, %299 : vector<8x32xf32>
    %301 = math.tanh %300 : vector<8x32xf32>
    %302 = arith.mulf %297, %301 : vector<8x32xf32>
    %303 = tpu.concatenate %302, %284 in 1 : vector<8x32xf32>, vector<8x32xf32> -> vector<8x64xf32>
    %cst_60 = arith.constant dense<0.000000e+00> : vector<8x256xf32>
    %304 = tpu.matmul %303, %0, %cst_60 {dimension_numbers = #tpu.dot_dimension_numbers<[1], [0], [0], [1], [0, 0, 1, 1], [], []>} : vector<8x64xf32>, vector<64x256xf32>, vector<8x256xf32> -> vector<8x256xf32>
    %305 = vector.extract_strided_slice %304 {offsets = [0, 128], sizes = [8, 128], strides = [1, 1]} : vector<8x256xf32> to vector<8x128xf32>
    %306 = vector.broadcast %1 : vector<1x128xf32> to vector<8x128xf32>
    %307 = arith.addf %305, %306 : vector<8x128xf32>
    %308 = arith.negf %307 : vector<8x128xf32>
    %309 = math.exp %308 : vector<8x128xf32>
    %cst_61 = arith.constant 1.000000e+00 : f32
    %310 = vector.broadcast %cst_61 : f32 to vector<8x128xf32>
    %311 = arith.addf %310, %309 : vector<8x128xf32>
    %312 = arith.divf %310, %311 : vector<8x128xf32>
    %313 = math.tanh %307 : vector<8x128xf32>
    %314 = vector.extract_strided_slice %312 {offsets = [0, 0], sizes = [8, 32], strides = [1, 1]} : vector<8x128xf32> to vector<8x32xf32>
    %315 = vector.extract_strided_slice %312 {offsets = [0, 32], sizes = [8, 32], strides = [1, 1]} : vector<8x128xf32> to vector<8x32xf32>
    %316 = vector.extract_strided_slice %313 {offsets = [0, 64], sizes = [8, 32], strides = [1, 1]} : vector<8x128xf32> to vector<8x32xf32>
    %317 = vector.extract_strided_slice %312 {offsets = [0, 96], sizes = [8, 32], strides = [1, 1]} : vector<8x128xf32> to vector<8x32xf32>
    %318 = arith.mulf %315, %282 : vector<8x32xf32>
    %319 = arith.mulf %314, %316 : vector<8x32xf32>
    %320 = arith.addf %318, %319 : vector<8x32xf32>
    %321 = math.tanh %320 : vector<8x32xf32>
    %322 = arith.mulf %317, %321 : vector<8x32xf32>
    %c56_62 = arith.constant 56 : index
    %c0_63 = arith.constant 0 : index
    %323 = vector.load %arg9[%c56_62, %c0_63] : memref<64x32xf32, #tpu.memory_space<vmem>>, vector<8x32xf32>
    tpu.vector_store %arg9[%c56_62, %c0_63], %322 {strides = array<i32>} : memref<64x32xf32, #tpu.memory_space<vmem>>, vector<8x32xf32>,
    %c0_64 = arith.constant 0 : index
    %c0_65 = arith.constant 0 : index
    %324 = vector.load %arg5[%c0_64, %c0_65] : memref<1x32xf32, #tpu.memory_space<vmem>>, vector<1x32xf32>
    %c0_66 = arith.constant 0 : index
    %c0_67 = arith.constant 0 : index
    %325 = vector.load %arg9[%c0_66, %c0_67] : memref<64x32xf32, #tpu.memory_space<vmem>>, vector<64x32xf32>
    %cst_68 = arith.constant dense<0.000000e+00> : vector<1x64xf32>
    %326 = tpu.matmul %324, %325, %cst_68 {dimension_numbers = #tpu.dot_dimension_numbers<[1], [1], [0], [0], [0, 0, 1, 0], [], []>} : vector<1x32xf32>, vector<64x32xf32>, vector<1x64xf32> -> vector<1x64xf32>
    %c0_69 = arith.constant 0 : index
    %c0_70 = arith.constant 0 : index
    %327 = vector.load %arg6[%c0_69, %c0_70] : memref<1x1xf32, #tpu.memory_space<vmem>>, vector<1x1xf32>
    %328 = vector.broadcast %327 : vector<1x1xf32> to vector<1x64xf32>
    %329 = arith.addf %326, %328 : vector<1x64xf32>
    %cst_71 = arith.constant 0.000000e+00 : f32
    %330 = vector.broadcast %cst_71 : f32 to vector<1x64xf32>
    %331 = arith.maximumf %329, %330 : vector<1x64xf32>
    %c0_72 = arith.constant 0 : index
    %c0_73 = arith.constant 0 : index
    %332 = vector.load %arg7[%c0_72, %c0_73] : memref<1x64xf32, #tpu.memory_space<vmem>>, vector<1x64xf32>
    tpu.vector_store %arg7[%c0_72, %c0_73], %331 {strides = array<i32>} : memref<1x64xf32, #tpu.memory_space<vmem>>, vector<1x64xf32>,
    return
  }
}

</mosaic_0001>

<bundles_post_ra>
// kernel: tpu_custom_call.1
= control target key start
LH: loop header
LB: loop body
LE: loop exit
PB: predicated region body
PF: predicated region fallthrough
CT: control target
= control target key end

     0   :  { %s2281_s0 = inlined_call_operand.vmem [shape: f32[64,4], index: 0, kind: input, shape index: {}]   ;;  %s2282_s1 = inlined_call_operand.vmem [shape: f32[4,128], index: 1, kind: input, shape index: {}]   ;;  %s2283_s2 = inlined_call_operand.vmem [shape: f32[1,128], index: 2, kind: input, shape index: {}]   ;;  %s2284_s3 = inlined_call_operand.hbm [shape: f32[64,256], index: 3, kind: input, shape index: {}]   ;;  %s2285_s4 = inlined_call_operand.vmem [shape: f32[1,128], index: 4, kind: input, shape index: {}]   ;;  %s2286_s5 = inlined_call_operand.vmem [shape: f32[1,32], index: 5, kind: input, shape index: {}]   ;;  %s2287_s6 = inlined_call_operand.<no memory space> [shape: f32[1,1], index: 6, kind: input, shape index: {}]   ;;  %s2288_s7 = inlined_call_operand.hbm [shape: f32[1,64], index: 7, kind: output, shape index: {}]  }
   0x1   :  { %v12_v0 = vstv %s2287_s6 }
   0x2   :  { %13 = vst [vmem:[#allocation4] sm:$0x1] %v12_v0 }
   0x3   :  { %14 = vsyncpa [#allocation6], 0 }
   0x4   :  { %15 = vsyncpa [#allocation7], 0  ;;  %s1887_s26 = smov [#allocation5]   ;;  %s1839_s30 = scalar_lea.hbm %s2284_s3, 2048 }
   0x5   :  { %s27_s27 = sshll.u32 %s1887_s26, 4  ;;  %p1840_p0 = scmp.ne.s32.totalorder %s2284_s3, %s1839_s30  ;;  %s28_s27 = int_to_ptr.vmem [resolvable:$true] %s27_s27 }
   0x6   :  { %p1843_p1 = scmp.lt.u32.totalorder %s1839_s30, %s2284_s3 }
   0x8   :  { %p1845_p2 = pnand %p1843_p1, %p1840_p0 }
   0xa   :  { %1848 = shalt.err (!%p1845_p2)
}
   0xb   :  { %s1849_s6 = scalar_lea.vmem %s28_s27, 2048  ;;  %p1854_p4 = scmp.lt.s32.totalorder %s28_s27, %s28_s27 }
   0xc   :  { %p1850_p3 = scmp.ne.s32.totalorder %s28_s27, %s1849_s6  ;;  %p1855_p5 = scmp.lt.s32.totalorder %s1849_s6, %s1849_s6 }
   0xe   :  { %p1856_p6 = por %p1855_p5, %p1854_p4 }
  0x10   :  { %p1857_p7 = pnand %p1856_p6, %p1850_p3 }
  0x12   :  { %1860 = shalt.err (!%p1857_p7)
}
  0x13   :  { %s1888_s12 = smov 256   ;;  %s1889_s13 = smov 16  }
  0x14   :  { %33 = dma.hbm_to_vmem [thread:$0]  %s2284_s3, 2048, %s28_s27, [#allocation6], %s1888_s12, %s1888_s12, %s1889_s13  }
  0x15   :  { %1883 = dma.done.wait [#allocation6], 2048  }
  0x16   :  { %1884 = vsyncadd [#allocation6], 4294965248  ;;  %vm101_vm0 = vcmask 1043456   ;;  %vm76_vm1 = vcmask 31744   ;;  %v68_v1 = vld [vmem:[%s2282_s1] sm:$0xf] }
  0x17   :  { %v60_v2 = vld [vmem:[%s2281_s0] sm:$0xff]  ;;  %v61_v3 = vld [vmem:[%s2281_s0 + $0x8] sm:$0xff]  ;;  %1522 = vmatprep.subr.msk.mxu0 %vm101_vm0, %v68_v1  ;;  %s1890_s1 = smov 64   ;;  %v45_v22 = vld [vmem:[#allocation5 + $0x10] sm:$0xff]  ;;  %v1892_v49 = vmov 0.0   ;;  %vm248_vm2 = vcmask 261120  }
  0x18   :  { %1524 = vmatprep.mubr.msk.f32.mxu0 %vm76_vm1, %v60_v2  ;;  %1523 = vmatpush3.msk.msra.mxu0 %vm101_vm0, %v68_v1  ;;  %v1966_v4 = vld [vmem:[%s2283_s2] ss:$0 sm:$0xff]  ;;  %s1891_s2 = smov 32   ;;  %v44_v18 = vld [vmem:[#allocation5 + $0x8] sm:$0xff]  ;;  %v43_v20 = vld [vmem:[#allocation5] sm:$0xff]  ;;  %vm250_vm3 = vcmask 523264  }
  0x19   :  { %1525 = vmatmul.mubr.msk.f32.vlgmr.msra.gmra.mrb[0].mxu0 %vm76_vm1, %v61_v3  ;;  %v46_v19 = vld [vmem:[#allocation5 + $0x18] sm:$0xff]  ;;  %v62_v23 = vld [vmem:[%s2281_s0 + $0x10] sm:$0xff]  ;;  %v1988_v25 = vpack.c.bf16 %v45_v22, %v43_v20  ;;  %v47_v28 = vld [vmem:[#allocation5 + $0x20] sm:$0xff]  ;;  %600 = vmatprep.mubr.f32.mxu1 %v1892_v49  ;;  %vm1894_vm4 = vmmov 0   ;;  %s1896_s13 = smov [#allocation8]   ;;  %vm1443_vm6 = vcmask 516096  }
  0x1a   :  { %v1980_v21 = vpack.c.bf16 %v46_v19, %v44_v18  ;;  %v63_v24 = vld [vmem:[%s2281_s0 + $0x18] sm:$0xff]  ;;  %1527 = vmatprep.mubr.msk.f32.mxu0 %vm76_vm1, %v62_v23  ;;  %v48_v26 = vld [vmem:[#allocation5 + $0x28] sm:$0xff]  ;;  %v64_v31 = vld [vmem:[%s2281_s0 + $0x20] sm:$0xff]  ;;  %s1451_s14 = sshll.u32 %s1896_s13, 4  ;;  %s1452_s14 = int_to_ptr.vmem [resolvable:$true] %s1451_s14 }
  0x1b   :  { %v50_v27 = vld [vmem:[#allocation5 + $0x38] sm:$0xff]  ;;  %v49_v30 = vld [vmem:[#allocation5 + $0x30] sm:$0xff]  ;;  %v65_v33 = vld [vmem:[%s2281_s0 + $0x28] sm:$0xff]  ;;  %s1861_s15 = scalar_lea.vmem %s1452_s14, 16  ;;  %s1865_s16 = scalar_lea.vmem %s1452_s14, 32 }
  0x1c   :  { %1556 = vmatprep.subr.bf16.mxu0 %v1980_v21  ;;  %v1993_v29 = vpack.c.bf16 %v50_v27, %v48_v26  ;;  %v1999_v32 = vpack.c.bf16 %v49_v30, %v47_v28  ;;  %v52_v34 = vld [vmem:[#allocation5 + $0x48] sm:$0xff]  ;;  %v54_v35 = vld [vmem:[#allocation5 + $0x58] sm:$0xff]  ;;  %v51_v37 = vld [vmem:[#allocation5 + $0x40] sm:$0xff]  ;;  %1588 = vmatprep.subr.bf16.mxu1 %v1980_v21  ;;  %p1862_p8 = scmp.ne.s32.totalorder %s1452_s14, %s1861_s15  ;;  %p1866_p9 = scmp.lt.s32.totalorder %s1452_s14, %s1452_s14 }
  0x1d   :  { %1528 = vmatmul.mubr.msk.f32.gmra.mrb[2].mxu0 %vm76_vm1, %v63_v24  ;;  %v2006_v36 = vpack.c.bf16 %v54_v35, %v52_v34  ;;  %v53_v38 = vld [vmem:[#allocation5 + $0x50] sm:$0xff]  ;;  %v56_v40 = vld [vmem:[#allocation5 + $0x68] sm:$0xff]  ;;  %v58_v41 = vld [vmem:[#allocation5 + $0x78] sm:$0xff]  ;;  %1590 = vmatpush1.bf16.msra.mxu1 %v1988_v25  ;;  %p1867_p10 = scmp.lt.s32.totalorder %s1865_s16, %s1861_s15 }
  0x1e   :  { %1558 = vmatpush1.bf16.msra.mxu0 %v1988_v25  ;;  %1530 = vmatprep.mubr.msk.f32.mxu0 %vm76_vm1, %v64_v31  ;;  %v66_v39 = vld [vmem:[%s2281_s0 + $0x30] sm:$0xff]  ;;  %v2016_v42 = vpack.c.bf16 %v53_v38, %v51_v37  ;;  %v67_v43 = vld [vmem:[%s2281_s0 + $0x38] sm:$0xff]  ;;  %v2023_v44 = vpack.c.bf16 %v58_v41, %v56_v40  ;;  %v55_v45 = vld [vmem:[#allocation5 + $0x60] sm:$0xff] }
  0x1f   :  { %1560 = vmatprep.subr.bf16.mxu0 %v1993_v29  ;;  %1592 = vmatprep.subr.bf16.mxu1 %v1993_v29  ;;  %v57_v46 = vld [vmem:[#allocation5 + $0x70] sm:$0xff]  ;;  %v2071_v61 = vld [vmem:[%s2285_s4] ss:$0 sm:$0xff]  ;;  %vm2251_vm5 = vmpackc.low %vm248_vm2, %vm248_vm2  ;;  %p1868_p11 = por %p1867_p10, %p1866_p9 }
  0x20   :  { %v2029_v48 = vpack.c.bf16 %v57_v46, %v55_v45 }
  0x21   :  { %1531 = vmatmul.mubr.msk.f32.gmra.mrb[4].mxu0 %vm76_vm1, %v65_v33  ;;  %1594 = vmatpush1.bf16.msra.mxu1 %v1999_v32  ;;  %p1869_p12 = pnand %p1868_p11, %p1862_p8 }
  0x22   :  { %1562 = vmatpush1.bf16.msra.mxu0 %v1999_v32  ;;  %1533 = vmatprep.mubr.msk.f32.mxu0 %vm76_vm1, %v66_v39 }
  0x23   :  { %1564 = vmatprep.subr.bf16.mxu0 %v2006_v36  ;;  %1596 = vmatprep.subr.bf16.mxu1 %v2006_v36 }
  0x25   :  { %1534 = vmatmul.mubr.msk.f32.gmra.mrb[6].mxu0 %vm76_vm1, %v67_v43  ;;  %1598 = vmatpush1.bf16.msra.mxu1 %v2016_v42 }
  0x26   :  { %1566 = vmatpush1.bf16.msra.mxu0 %v2016_v42  ;;  %1600 = vmatprep.subr.bf16.mxu1 %v2023_v44 }
  0x27   :  { %1568 = vmatprep.subr.bf16.mxu0 %v2023_v44  ;;  %318 = vmatprep.mubr.f32.mxu0 %v1892_v49 }
  0x29   :  { %1602 = vmatpush1.bf16.msra.mxu1 %v2029_v48 }
  0x2a   :  { %1570 = vmatpush1.bf16.msra.mxu0 %v2029_v48  ;;  %1620 = vmatprep.subr.bf16.mxu1 %v1980_v21 }
  0x2b   :  { %1572 = vmatprep.subr.bf16.mxu0 %v1980_v21 }
  0xec   :  { %v1968_v5 = vpop.f32.mrb[0].mxu0 }
  0xed   :  { %v171_v6 = vpop.f32.mrb[1].mxu0  ;;  %v177_v60 = vadd.f32 %v1968_v5, %v1966_v4 }
  0xee   :  { %v172_v7 = vadd.f32 %v1966_v4, %v171_v6 }
  0xf0   :  { %1711 = vtanh.f32 %v172_v7  ;;  %v1470_v9 = vmul.f32 -1.442695, %v172_v7  ;;  %v2043_v52 = vpop.f32.mrb[2].mxu0 }
  0xf1   :  { %v2045_v53 = vpop.f32.mrb[3].mxu0 }
  0xf2   :  { %1713 = vpow2.f32 %v1470_v9  ;;  %v182_v37 = vadd.f32 %v1966_v4, %v2045_v53 }
  0xf4   :  { %v2047_v54 = vpop.f32.mrb[4].mxu0 }
  0xf5   :  { %v2049_v55 = vpop.f32.mrb[5].mxu0 }
  0xf8   :  { %v2051_v56 = vpop.f32.mrb[6].mxu0 }
  0xf9   :  { %v2053_v57 = vpop.f32.mrb[7].mxu0 }
  0xfa   :  { %v1712_v8 = vpop.eup %1711 }
  0xfb   :  { %229 = vrot.lane.b32.xlu0 %v1712_v8, %s1890_s1 }
  0xfc   :  { %v1714_v10 = vpop.eup %1713 }
  0xfd   :  { %v223_v11 = vadd.f32 1.0, %v1714_v10 }
  0xff   :  { %1715 = vrcp.f32 %v223_v11 }
 0x109   :  { %v1972_v12 = vpop.eup %1715 }
 0x10a   :  { %v227_v15 = vmul.f32 0.0, %v1972_v12 }
 0x16d   :  { %v230_v13 = vpop.permute.xlu0 %229 }
 0x16e   :  { %v232_v14 = vmul.f32 %v1972_v12, %v230_v13 }
 0x170   :  { %234 = vrot.lane.b32.xlu0 %v232_v14, %s1891_s2 }
 0x1e2   :  { %v235_v16 = vpop.permute.xlu0 %234 }
 0x1e3   :  { %v1977_v17 = vadd.f32 %v235_v16, %v227_v15 }
 0x1e5   :  { %1717 = vtanh.f32 %v1977_v17 }
 0x1ef   :  { %v1718_v47 = vpop.eup %1717 }
 0x1f0   :  { %240 = vrot.lane.b32.xlu1 %v1718_v47, %s1890_s1 }
 0x262   :  { %v241_v50 = vpop.permute.xlu1 %240 }
 0x263   :  { %v243_v51 = vmul.f32 %v1972_v12, %v241_v50 }
 0x265   :  { %245 = vrot.lane.b32.xlu1 %v243_v51, %s1891_s2 }
 0x2d7   :  { %v246_v58 = vpop.permute.xlu1 %245 }
 0x2d8   :  { %v249_v59 = vsel %vm248_vm2, %v246_v58, 0.0 }
 0x2d9   :  { %1471 = vmatmul.mubr.msk.f32.vlgmr.msra.gmra.mrb[8].mxu0 %vm250_vm3, %v249_v59 }
 0x2da   :  { %1574 = vmatpush1.bf16.msra.mxu0 %v1988_v25  ;;  %462 = vmatprep.mubr.f32.mxu0 %v1892_v49 }
 0x2db   :  { %1576 = vmatprep.subr.bf16.mxu0 %v1993_v29 }
 0x2de   :  { %1578 = vmatpush1.bf16.msra.mxu0 %v1999_v32 }
 0x2df   :  { %1580 = vmatprep.subr.bf16.mxu0 %v2006_v36 }
 0x2e2   :  { %1582 = vmatpush1.bf16.msra.mxu0 %v2016_v42 }
 0x2e3   :  { %1584 = vmatprep.subr.bf16.mxu0 %v2023_v44 }
 0x2e6   :  { %1586 = vmatpush1.bf16.msra.mxu0 %v2029_v48 }
 0x2e7   :  { %1604 = vmatprep.subr.bf16.mxu0 %v1980_v21 }
 0x3ac   :  { %v320_v62 = vpop.f32.mrb[8].mxu0 }
 0x3ad   :  { %v362_v63 = vadd.f32 %v320_v62, %v177_v60  ;;  %v322_v0 = vpop.f32.mrb[9].mxu0 }
 0x3ae   :  { %v331_v1 = vadd.f32 %v2071_v61, %v322_v0 }
 0x3af   :  { %1719 = vtanh.f32 %v362_v63  ;;  %v1474_v6 = vmul.f32 -1.442695, %v362_v63 }
 0x3b0   :  { %1721 = vtanh.f32 %v331_v1  ;;  %v1473_v5 = vmul.f32 -1.442695, %v331_v1 }
 0x3b1   :  { %1723 = vpow2.f32 %v1474_v6 }
 0x3b2   :  { %1725 = vpow2.f32 %v1473_v5 }
 0x3b9   :  { %v1720_v2 = vpop.eup %1719 }
 0x3ba   :  { %v1722_v3 = vpop.eup %1721  ;;  %372 = vrot.lane.b32.xlu1 %v1720_v2, %s1890_s1 }
 0x3bb   :  { %341 = vrot.lane.b32.xlu0 %v1722_v3, %s1890_s1  ;;  %v1724_v7 = vpop.eup %1723 }
 0x3bc   :  { %v1726_v8 = vpop.eup %1725  ;;  %v366_v9 = vadd.f32 1.0, %v1724_v7 }
 0x3bd   :  { %v335_v10 = vadd.f32 1.0, %v1726_v8 }
 0x3be   :  { %1727 = vrcp.f32 %v366_v9 }
 0x3bf   :  { %1729 = vrcp.f32 %v335_v10 }
 0x3c8   :  { %v1728_v11 = vpop.eup %1727 }
 0x3c9   :  { %v1730_v13 = vpop.eup %1729  ;;  %v370_v18 = vmul.f32 %v1728_v11, %v1977_v17 }
 0x3ca   :  { %v339_v20 = vmul.f32 0.0, %v1730_v13 }
 0x42c   :  { %v373_v12 = vpop.permute.xlu1 %372 }
 0x42d   :  { %v375_v14 = vmul.f32 %v1728_v11, %v373_v12  ;;  %v342_v15 = vpop.permute.xlu0 %341 }
 0x42e   :  { %v344_v16 = vmul.f32 %v1730_v13, %v342_v15 }
 0x42f   :  { %377 = vrot.lane.b32.xlu1 %v375_v14, %s1891_s2 }
 0x430   :  { %346 = vrot.lane.b32.xlu0 %v344_v16, %s1891_s2 }
 0x4a1   :  { %v378_v19 = vpop.permute.xlu1 %377 }
 0x4a2   :  { %v380_v22 = vadd.f32 %v378_v19, %v370_v18  ;;  %v347_v23 = vpop.permute.xlu0 %346  ;;  %v187_v19 = vadd.f32 %v2043_v52, %v1966_v4 }
 0x4a3   :  { %v349_v24 = vadd.f32 %v347_v23, %v339_v20 }
 0x4a4   :  { %1731 = vtanh.f32 %v380_v22 }
 0x4a5   :  { %1733 = vtanh.f32 %v349_v24 }
 0x4ae   :  { %v1732_v26 = vpop.eup %1731 }
 0x4af   :  { %v1734_v27 = vpop.eup %1733  ;;  %383 = vrot.lane.b32.xlu1 %v1732_v26, %s1890_s1 }
 0x4b0   :  { %352 = vrot.lane.b32.xlu0 %v1734_v27, %s1890_s1 }
 0x521   :  { %v384_v28 = vpop.permute.xlu1 %383 }
 0x522   :  { %v386_v30 = vmul.f32 %v1728_v11, %v384_v28  ;;  %v353_v31 = vpop.permute.xlu0 %352 }
 0x523   :  { %v2081_v33 = vmul.f32 %v1730_v13, %v353_v31 }
 0x524   :  { %388 = vrot.lane.b32.xlu0 %v386_v30, %s1891_s2 }
 0x525   :  { %391 = vrot.lane.b32.xlu1 %v2081_v33, %s1890_s1 }
 0x596   :  { %v389_v17 = vpop.permute.xlu0 %388 }
 0x597   :  { %v392_v34 = vpop.permute.xlu1 %391 }
 0x598   :  { %v394_v35 = vsel %vm248_vm2, %v389_v17, %v392_v34 }
 0x599   :  { %1475 = vmatmul.mubr.msk.f32.vlgmr.msra.gmra.mrb[10].mxu0 %vm250_vm3, %v394_v35 }
 0x59a   :  { %1606 = vmatpush1.bf16.msra.mxu0 %v1988_v25  ;;  %738 = vmatprep.mubr.f32.mxu0 %v1892_v49 }
 0x59b   :  { %1608 = vmatprep.subr.bf16.mxu0 %v1993_v29 }
 0x59e   :  { %1610 = vmatpush1.bf16.msra.mxu0 %v1999_v32 }
 0x59f   :  { %1612 = vmatprep.subr.bf16.mxu0 %v2006_v36 }
 0x5a2   :  { %1614 = vmatpush1.bf16.msra.mxu0 %v2016_v42 }
 0x5a3   :  { %1616 = vmatprep.subr.bf16.mxu0 %v2023_v44 }
 0x5a6   :  { %1618 = vmatpush1.bf16.msra.mxu0 %v2029_v48 }
 0x5a7   :  { %1636 = vmatprep.subr.bf16.mxu0 %v1980_v21 }
 0x66c   :  { %v464_v38 = vpop.f32.mrb[10].mxu0 }
 0x66d   :  { %v500_v39 = vadd.f32 %v464_v38, %v182_v37  ;;  %v466_v40 = vpop.f32.mrb[11].mxu0 }
 0x66e   :  { %v469_v41 = vadd.f32 %v2071_v61, %v466_v40 }
 0x66f   :  { %1735 = vtanh.f32 %v500_v39  ;;  %v1477_v46 = vmul.f32 -1.442695, %v500_v39 }
 0x670   :  { %1737 = vtanh.f32 %v469_v41  ;;  %v1476_v47 = vmul.f32 -1.442695, %v469_v41 }
 0x671   :  { %1739 = vpow2.f32 %v1477_v46 }
 0x672   :  { %1741 = vpow2.f32 %v1476_v47 }
 0x679   :  { %v1736_v43 = vpop.eup %1735 }
 0x67a   :  { %v1738_v45 = vpop.eup %1737  ;;  %510 = vrot.lane.b32.xlu1 %v1736_v43, %s1890_s1 }
 0x67b   :  { %479 = vrot.lane.b32.xlu0 %v1738_v45, %s1890_s1  ;;  %v1740_v50 = vpop.eup %1739 }
 0x67c   :  { %v1742_v51 = vpop.eup %1741  ;;  %v504_v53 = vadd.f32 1.0, %v1740_v50 }
 0x67d   :  { %v473_v58 = vadd.f32 1.0, %v1742_v51 }
 0x67e   :  { %1743 = vrcp.f32 %v504_v53 }
 0x67f   :  { %1745 = vrcp.f32 %v473_v58 }
 0x688   :  { %v1744_v59 = vpop.eup %1743 }
 0x689   :  { %v1746_v62 = vpop.eup %1745  ;;  %v508_v2 = vmul.f32 %v1744_v59, %v380_v22 }
 0x68a   :  { %v477_v6 = vmul.f32 %v1746_v62, %v349_v24 }
 0x6ec   :  { %v511_v60 = vpop.permute.xlu1 %510 }
 0x6ed   :  { %v513_v63 = vmul.f32 %v1744_v59, %v511_v60  ;;  %v480_v0 = vpop.permute.xlu0 %479 }
 0x6ee   :  { %v482_v1 = vmul.f32 %v1746_v62, %v480_v0 }
 0x6ef   :  { %515 = vrot.lane.b32.xlu1 %v513_v63, %s1891_s2 }
 0x6f0   :  { %484 = vrot.lane.b32.xlu0 %v482_v1, %s1891_s2 }
 0x761   :  { %v516_v3 = vpop.permute.xlu1 %515 }
 0x762   :  { %v518_v5 = vadd.f32 %v516_v3, %v508_v2  ;;  %v485_v7 = vpop.permute.xlu0 %484  ;;  %v192_v3 = vadd.f32 %v1966_v4, %v2049_v55 }
 0x763   :  { %v487_v8 = vadd.f32 %v485_v7, %v477_v6 }
 0x764   :  { %1747 = vtanh.f32 %v518_v5 }
 0x765   :  { %1749 = vtanh.f32 %v487_v8 }
 0x76e   :  { %v1748_v9 = vpop.eup %1747 }
 0x76f   :  { %v1750_v10 = vpop.eup %1749  ;;  %521 = vrot.lane.b32.xlu1 %v1748_v9, %s1890_s1 }
 0x770   :  { %490 = vrot.lane.b32.xlu0 %v1750_v10, %s1890_s1 }
 0x7e1   :  { %v522_v11 = vpop.permute.xlu1 %521 }
 0x7e2   :  { %v524_v12 = vmul.f32 %v1744_v59, %v522_v11  ;;  %v491_v13 = vpop.permute.xlu0 %490 }
 0x7e3   :  { %v2106_v14 = vmul.f32 %v1746_v62, %v491_v13 }
 0x7e4   :  { %526 = vrot.lane.b32.xlu0 %v524_v12, %s1891_s2 }
 0x7e5   :  { %529 = vrot.lane.b32.xlu1 %v2106_v14, %s1890_s1 }
 0x856   :  { %v527_v15 = vpop.permute.xlu0 %526 }
 0x857   :  { %v530_v16 = vpop.permute.xlu1 %529 }
 0x858   :  { %v532_v18 = vsel %vm248_vm2, %v527_v15, %v530_v16 }
 0x859   :  { %1478 = vmatmul.mubr.msk.f32.vlgmr.msra.gmra.mrb[0].mxu1 %vm250_vm3, %v532_v18 }
 0x85a   :  { %1622 = vmatpush1.bf16.msra.mxu1 %v1988_v25  ;;  %876 = vmatprep.mubr.f32.mxu1 %v1892_v49 }
 0x85b   :  { %1624 = vmatprep.subr.bf16.mxu1 %v1993_v29 }
 0x85e   :  { %1626 = vmatpush1.bf16.msra.mxu1 %v1999_v32 }
 0x85f   :  { %1628 = vmatprep.subr.bf16.mxu1 %v2006_v36 }
 0x862   :  { %1630 = vmatpush1.bf16.msra.mxu1 %v2016_v42 }
 0x863   :  { %1632 = vmatprep.subr.bf16.mxu1 %v2023_v44 }
 0x866   :  { %1634 = vmatpush1.bf16.msra.mxu1 %v2029_v48 }
 0x867   :  { %1652 = vmatprep.subr.bf16.mxu1 %v1980_v21 }
 0x92c   :  { %v602_v20 = vpop.f32.mrb[0].mxu1 }
 0x92d   :  { %v638_v22 = vadd.f32 %v602_v20, %v187_v19  ;;  %v604_v23 = vpop.f32.mrb[1].mxu1 }
 0x92e   :  { %v607_v24 = vadd.f32 %v2071_v61, %v604_v23 }
 0x92f   :  { %1751 = vtanh.f32 %v638_v22  ;;  %v1480_v28 = vmul.f32 -1.442695, %v638_v22 }
 0x930   :  { %1753 = vtanh.f32 %v607_v24  ;;  %v1479_v30 = vmul.f32 -1.442695, %v607_v24 }
 0x931   :  { %1755 = vpow2.f32 %v1480_v28 }
 0x932   :  { %1757 = vpow2.f32 %v1479_v30 }
 0x939   :  { %v1752_v26 = vpop.eup %1751 }
 0x93a   :  { %v1754_v27 = vpop.eup %1753  ;;  %648 = vrot.lane.b32.xlu1 %v1752_v26, %s1890_s1 }
 0x93b   :  { %617 = vrot.lane.b32.xlu0 %v1754_v27, %s1890_s1  ;;  %v1756_v31 = vpop.eup %1755 }
 0x93c   :  { %v1758_v17 = vpop.eup %1757  ;;  %v642_v52 = vadd.f32 1.0, %v1756_v31 }
 0x93d   :  { %v611_v34 = vadd.f32 1.0, %v1758_v17 }
 0x93e   :  { %1759 = vrcp.f32 %v642_v52 }
 0x93f   :  { %1761 = vrcp.f32 %v611_v34 }
 0x948   :  { %v1760_v35 = vpop.eup %1759 }
 0x949   :  { %v1762_v38 = vpop.eup %1761  ;;  %v646_v43 = vmul.f32 %v1760_v35, %v518_v5 }
 0x94a   :  { %v615_v46 = vmul.f32 %v1762_v38, %v487_v8 }
 0x9ac   :  { %v649_v37 = vpop.permute.xlu1 %648 }
 0x9ad   :  { %v651_v39 = vmul.f32 %v1760_v35, %v649_v37  ;;  %v618_v40 = vpop.permute.xlu0 %617 }
 0x9ae   :  { %v620_v41 = vmul.f32 %v1762_v38, %v618_v40 }
 0x9af   :  { %653 = vrot.lane.b32.xlu1 %v651_v39, %s1891_s2 }
 0x9b0   :  { %622 = vrot.lane.b32.xlu0 %v620_v41, %s1891_s2 }
 0xa21   :  { %v654_v45 = vpop.permute.xlu1 %653 }
 0xa22   :  { %v656_v47 = vadd.f32 %v654_v45, %v646_v43  ;;  %v623_v50 = vpop.permute.xlu0 %622  ;;  %v197_v43 = vadd.f32 %v2047_v54, %v1966_v4 }
 0xa23   :  { %v625_v51 = vadd.f32 %v623_v50, %v615_v46 }
 0xa24   :  { %1763 = vtanh.f32 %v656_v47 }
 0xa25   :  { %1765 = vtanh.f32 %v625_v51 }
 0xa2e   :  { %v1764_v53 = vpop.eup %1763 }
 0xa2f   :  { %v1766_v58 = vpop.eup %1765  ;;  %659 = vrot.lane.b32.xlu1 %v1764_v53, %s1890_s1 }
 0xa30   :  { %628 = vrot.lane.b32.xlu0 %v1766_v58, %s1890_s1 }
 0xaa1   :  { %v660_v59 = vpop.permute.xlu1 %659 }
 0xaa2   :  { %v662_v60 = vmul.f32 %v1760_v35, %v660_v59  ;;  %v629_v62 = vpop.permute.xlu0 %628 }
 0xaa3   :  { %v2131_v63 = vmul.f32 %v1762_v38, %v629_v62 }
 0xaa4   :  { %664 = vrot.lane.b32.xlu0 %v662_v60, %s1891_s2 }
 0xaa5   :  { %667 = vrot.lane.b32.xlu1 %v2131_v63, %s1890_s1 }
 0xb16   :  { %v665_v0 = vpop.permute.xlu0 %664 }
 0xb17   :  { %v668_v1 = vpop.permute.xlu1 %667 }
 0xb18   :  { %v670_v2 = vsel %vm248_vm2, %v665_v0, %v668_v1 }
 0xb19   :  { %1481 = vmatmul.mubr.msk.f32.vlgmr.msra.gmra.mrb[12].mxu0 %vm250_vm3, %v670_v2 }
 0xb1a   :  { %1638 = vmatpush1.bf16.msra.mxu0 %v1988_v25  ;;  %1014 = vmatprep.mubr.f32.mxu0 %v1892_v49 }
 0xb1b   :  { %1640 = vmatprep.subr.bf16.mxu0 %v1993_v29 }
 0xb1e   :  { %1642 = vmatpush1.bf16.msra.mxu0 %v1999_v32 }
 0xb1f   :  { %1644 = vmatprep.subr.bf16.mxu0 %v2006_v36 }
 0xb22   :  { %1646 = vmatpush1.bf16.msra.mxu0 %v2016_v42 }
 0xb23   :  { %1648 = vmatprep.subr.bf16.mxu0 %v2023_v44 }
 0xb26   :  { %1650 = vmatpush1.bf16.msra.mxu0 %v2029_v48 }
 0xb27   :  { %1668 = vmatprep.subr.bf16.mxu0 %v1980_v21 }
 0xbec   :  { %v740_v6 = vpop.f32.mrb[12].mxu0 }
 0xbed   :  { %v776_v5 = vadd.f32 %v740_v6, %v192_v3  ;;  %v742_v7 = vpop.f32.mrb[13].mxu0 }
 0xbee   :  { %v745_v8 = vadd.f32 %v2071_v61, %v742_v7 }
 0xbef   :  { %1767 = vtanh.f32 %v776_v5  ;;  %v1483_v11 = vmul.f32 -1.442695, %v776_v5 }
 0xbf0   :  { %1769 = vtanh.f32 %v745_v8  ;;  %v1482_v12 = vmul.f32 -1.442695, %v745_v8 }
 0xbf1   :  { %1771 = vpow2.f32 %v1483_v11 }
 0xbf2   :  { %1773 = vpow2.f32 %v1482_v12 }
 0xbf9   :  { %v1768_v9 = vpop.eup %1767 }
 0xbfa   :  { %v1770_v10 = vpop.eup %1769  ;;  %786 = vrot.lane.b32.xlu1 %v1768_v9, %s1890_s1 }
 0xbfb   :  { %755 = vrot.lane.b32.xlu0 %v1770_v10, %s1890_s1  ;;  %v1772_v21 = vpop.eup %1771 }
 0xbfc   :  { %v1774_v13 = vpop.eup %1773  ;;  %v780_v55 = vadd.f32 1.0, %v1772_v21 }
 0xbfd   :  { %v749_v15 = vadd.f32 1.0, %v1774_v13 }
 0xbfe   :  { %1775 = vrcp.f32 %v780_v55 }
 0xbff   :  { %1777 = vrcp.f32 %v749_v15 }
 0xc08   :  { %v1776_v16 = vpop.eup %1775 }
 0xc09   :  { %v1778_v19 = vpop.eup %1777  ;;  %v784_v24 = vmul.f32 %v1776_v16, %v656_v47 }
 0xc0a   :  { %v753_v27 = vmul.f32 %v1778_v19, %v625_v51 }
 0xc6c   :  { %v787_v18 = vpop.permute.xlu1 %786 }
 0xc6d   :  { %v789_v20 = vmul.f32 %v1776_v16, %v787_v18  ;;  %v756_v22 = vpop.permute.xlu0 %755 }
 0xc6e   :  { %v758_v23 = vmul.f32 %v1778_v19, %v756_v22 }
 0xc6f   :  { %791 = vrot.lane.b32.xlu1 %v789_v20, %s1891_s2 }
 0xc70   :  { %760 = vrot.lane.b32.xlu0 %v758_v23, %s1891_s2 }
 0xce1   :  { %v792_v26 = vpop.permute.xlu1 %791 }
 0xce2   :  { %v794_v28 = vadd.f32 %v792_v26, %v784_v24  ;;  %v761_v30 = vpop.permute.xlu0 %760  ;;  %v202_v24 = vadd.f32 %v1966_v4, %v2053_v57 }
 0xce3   :  { %v763_v31 = vadd.f32 %v761_v30, %v753_v27 }
 0xce4   :  { %1779 = vtanh.f32 %v794_v28 }
 0xce5   :  { %1781 = vtanh.f32 %v763_v31 }
 0xcee   :  { %v1780_v17 = vpop.eup %1779 }
 0xcef   :  { %v1782_v52 = vpop.eup %1781  ;;  %797 = vrot.lane.b32.xlu1 %v1780_v17, %s1890_s1 }
 0xcf0   :  { %766 = vrot.lane.b32.xlu0 %v1782_v52, %s1890_s1 }
 0xd61   :  { %v798_v34 = vpop.permute.xlu1 %797 }
 0xd62   :  { %v800_v35 = vmul.f32 %v1776_v16, %v798_v34  ;;  %v767_v37 = vpop.permute.xlu0 %766 }
 0xd63   :  { %v2156_v38 = vmul.f32 %v1778_v19, %v767_v37 }
 0xd64   :  { %802 = vrot.lane.b32.xlu0 %v800_v35, %s1891_s2 }
 0xd65   :  { %805 = vrot.lane.b32.xlu1 %v2156_v38, %s1890_s1 }
 0xdd6   :  { %v803_v39 = vpop.permute.xlu0 %802 }
 0xdd7   :  { %v806_v40 = vpop.permute.xlu1 %805 }
 0xdd8   :  { %v808_v41 = vsel %vm248_vm2, %v803_v39, %v806_v40 }
 0xdd9   :  { %1484 = vmatmul.mubr.msk.f32.vlgmr.msra.gmra.mrb[2].mxu1 %vm250_vm3, %v808_v41 }
 0xdda   :  { %1654 = vmatpush1.bf16.msra.mxu1 %v1988_v25  ;;  %1152 = vmatprep.mubr.f32.mxu1 %v1892_v49 }
 0xddb   :  { %1656 = vmatprep.subr.bf16.mxu1 %v1993_v29 }
 0xdde   :  { %1658 = vmatpush1.bf16.msra.mxu1 %v1999_v32 }
 0xddf   :  { %1660 = vmatprep.subr.bf16.mxu1 %v2006_v36 }
 0xde2   :  { %1662 = vmatpush1.bf16.msra.mxu1 %v2016_v42 }
 0xde3   :  { %1664 = vmatprep.subr.bf16.mxu1 %v2023_v44 }
 0xde6   :  { %1666 = vmatpush1.bf16.msra.mxu1 %v2029_v48 }
 0xeac   :  { %v878_v45 = vpop.f32.mrb[2].mxu1 }
 0xead   :  { %v914_v46 = vadd.f32 %v878_v45, %v197_v43  ;;  %v880_v47 = vpop.f32.mrb[3].mxu1 }
 0xeae   :  { %v883_v50 = vadd.f32 %v2071_v61, %v880_v47 }
 0xeaf   :  { %1783 = vtanh.f32 %v914_v46  ;;  %v1486_v58 = vmul.f32 -1.442695, %v914_v46 }
 0xeb0   :  { %1785 = vtanh.f32 %v883_v50  ;;  %v1485_v59 = vmul.f32 -1.442695, %v883_v50 }
 0xeb1   :  { %1787 = vpow2.f32 %v1486_v58 }
 0xeb2   :  { %1789 = vpow2.f32 %v1485_v59 }
 0xeb9   :  { %v1784_v51 = vpop.eup %1783 }
 0xeba   :  { %v1786_v53 = vpop.eup %1785  ;;  %924 = vrot.lane.b32.xlu1 %v1784_v51, %s1890_s1 }
 0xebb   :  { %893 = vrot.lane.b32.xlu0 %v1786_v53, %s1890_s1  ;;  %v1788_v60 = vpop.eup %1787 }
 0xebc   :  { %v1790_v62 = vpop.eup %1789  ;;  %v918_v54 = vadd.f32 1.0, %v1788_v60 }
 0xebd   :  { %v887_v0 = vadd.f32 1.0, %v1790_v62 }
 0xebe   :  { %1791 = vrcp.f32 %v918_v54 }
 0xebf   :  { %1793 = vrcp.f32 %v887_v0  ;;  %v207_v0 = vadd.f32 %v2051_v56, %v1966_v4 }
 0xec8   :  { %v1792_v1 = vpop.eup %1791 }
 0xec9   :  { %v1794_v3 = vpop.eup %1793  ;;  %v922_v8 = vmul.f32 %v1792_v1, %v794_v28 }
 0xeca   :  { %v891_v10 = vmul.f32 %v1794_v3, %v763_v31 }
 0xf2c   :  { %v925_v2 = vpop.permute.xlu1 %924 }
 0xf2d   :  { %v927_v6 = vmul.f32 %v1792_v1, %v925_v2  ;;  %v894_v5 = vpop.permute.xlu0 %893 }
 0xf2e   :  { %v896_v7 = vmul.f32 %v1794_v3, %v894_v5 }
 0xf2f   :  { %929 = vrot.lane.b32.xlu1 %v927_v6, %s1891_s2 }
 0xf30   :  { %898 = vrot.lane.b32.xlu0 %v896_v7, %s1891_s2 }
 0xfa1   :  { %v930_v9 = vpop.permute.xlu1 %929 }
 0xfa2   :  { %v932_v11 = vadd.f32 %v930_v9, %v922_v8  ;;  %v899_v12 = vpop.permute.xlu0 %898 }
 0xfa3   :  { %v901_v21 = vadd.f32 %v899_v12, %v891_v10 }
 0xfa4   :  { %1795 = vtanh.f32 %v932_v11 }
 0xfa5   :  { %1797 = vtanh.f32 %v901_v21 }
 0xfae   :  { %v1796_v13 = vpop.eup %1795 }
 0xfaf   :  { %v1798_v55 = vpop.eup %1797  ;;  %935 = vrot.lane.b32.xlu1 %v1796_v13, %s1890_s1 }
 0xfb0   :  { %904 = vrot.lane.b32.xlu0 %v1798_v55, %s1890_s1 }
0x1021   :  { %v936_v15 = vpop.permute.xlu1 %935 }
0x1022   :  { %v938_v16 = vmul.f32 %v1792_v1, %v936_v15  ;;  %v905_v18 = vpop.permute.xlu0 %904 }
0x1023   :  { %v2180_v19 = vmul.f32 %v1794_v3, %v905_v18 }
0x1024   :  { %940 = vrot.lane.b32.xlu0 %v938_v16, %s1891_s2 }
0x1025   :  { %943 = vrot.lane.b32.xlu1 %v2180_v19, %s1890_s1 }
0x1096   :  { %v941_v20 = vpop.permute.xlu0 %940 }
0x1097   :  { %v944_v22 = vpop.permute.xlu1 %943 }
0x1098   :  { %v946_v23 = vsel %vm248_vm2, %v941_v20, %v944_v22 }
0x1099   :  { %1487 = vmatmul.mubr.msk.f32.vlgmr.msra.gmra.mrb[14].mxu0 %vm250_vm3, %v946_v23 }
0x109a   :  { %1670 = vmatpush1.bf16.msra.mxu0 %v1988_v25  ;;  %1290 = vmatprep.mubr.f32.mxu0 %v1892_v49 }
0x109b   :  { %1672 = vmatprep.subr.bf16.mxu0 %v1993_v29 }
0x109e   :  { %1674 = vmatpush1.bf16.msra.mxu0 %v1999_v32 }
0x109f   :  { %1676 = vmatprep.subr.bf16.mxu0 %v2006_v36 }
0x10a2   :  { %1678 = vmatpush1.bf16.msra.mxu0 %v2016_v42 }
0x10a3   :  { %1680 = vmatprep.subr.bf16.mxu0 %v2023_v44 }
0x10a6   :  { %1682 = vmatpush1.bf16.msra.mxu0 %v2029_v48 }
0x116c   :  { %v1016_v26 = vpop.f32.mrb[14].mxu0 }
0x116d   :  { %v1052_v27 = vadd.f32 %v1016_v26, %v202_v24  ;;  %v1018_v25 = vpop.f32.mrb[15].mxu0 }
0x116e   :  { %v1021_v28 = vadd.f32 %v2071_v61, %v1018_v25 }
0x116f   :  { %1799 = vtanh.f32 %v1052_v27  ;;  %v1489_v36 = vmul.f32 -1.442695, %v1052_v27 }
0x1170   :  { %1801 = vtanh.f32 %v1021_v28  ;;  %v1488_v42 = vmul.f32 -1.442695, %v1021_v28 }
0x1171   :  { %1803 = vpow2.f32 %v1489_v36 }
0x1172   :  { %1805 = vpow2.f32 %v1488_v42 }
0x1179   :  { %v1800_v29 = vpop.eup %1799 }
0x117a   :  { %v1802_v32 = vpop.eup %1801  ;;  %1062 = vrot.lane.b32.xlu1 %v1800_v29, %s1890_s1 }
0x117b   :  { %1031 = vrot.lane.b32.xlu0 %v1802_v32, %s1890_s1  ;;  %v1804_v44 = vpop.eup %1803 }
0x117c   :  { %v1806_v48 = vpop.eup %1805  ;;  %v1056_v57 = vadd.f32 1.0, %v1804_v44 }
0x117d   :  { %v1025_v30 = vadd.f32 1.0, %v1806_v48 }
0x117e   :  { %1807 = vrcp.f32 %v1056_v57 }
0x117f   :  { %1809 = vrcp.f32 %v1025_v30 }
0x1188   :  { %v1808_v31 = vpop.eup %1807 }
0x1189   :  { %v1810_v52 = vpop.eup %1809  ;;  %v1060_v39 = vmul.f32 %v1808_v31, %v932_v11 }
0x118a   :  { %v1029_v41 = vmul.f32 %v1810_v52, %v901_v21 }
0x11ec   :  { %v1063_v17 = vpop.permute.xlu1 %1062 }
0x11ed   :  { %v1065_v34 = vmul.f32 %v1808_v31, %v1063_v17  ;;  %v1032_v35 = vpop.permute.xlu0 %1031 }
0x11ee   :  { %v1034_v37 = vmul.f32 %v1810_v52, %v1032_v35 }
0x11ef   :  { %1067 = vrot.lane.b32.xlu1 %v1065_v34, %s1891_s2 }
0x11f0   :  { %1036 = vrot.lane.b32.xlu0 %v1034_v37, %s1891_s2 }
0x1261   :  { %v1068_v40 = vpop.permute.xlu1 %1067 }
0x1262   :  { %v1070_v43 = vadd.f32 %v1068_v40, %v1060_v39  ;;  %v1037_v45 = vpop.permute.xlu0 %1036 }
0x1263   :  { %v1039_v46 = vadd.f32 %v1037_v45, %v1029_v41 }
0x1264   :  { %1811 = vtanh.f32 %v1070_v43 }
0x1265   :  { %1813 = vtanh.f32 %v1039_v46 }
0x126e   :  { %v1812_v47 = vpop.eup %1811 }
0x126f   :  { %v1814_v50 = vpop.eup %1813  ;;  %1073 = vrot.lane.b32.xlu1 %v1812_v47, %s1890_s1 }
0x1270   :  { %1042 = vrot.lane.b32.xlu0 %v1814_v50, %s1890_s1 }
0x12e1   :  { %v1074_v51 = vpop.permute.xlu1 %1073 }
0x12e2   :  { %v1076_v53 = vmul.f32 %v1808_v31, %v1074_v51  ;;  %v1043_v58 = vpop.permute.xlu0 %1042 }
0x12e3   :  { %v2204_v59 = vmul.f32 %v1810_v52, %v1043_v58  ;;  %v1335_v58 = vld [vmem:[#allocation4] sm:$0x1] }
0x12e4   :  { %1078 = vrot.lane.b32.xlu0 %v1076_v53, %s1891_s2 }
0x12e5   :  { %1081 = vrot.lane.b32.xlu1 %v2204_v59, %s1890_s1 }
0x1356   :  { %v1079_v60 = vpop.permute.xlu0 %1078 }
0x1357   :  { %v1082_v62 = vpop.permute.xlu1 %1081 }
0x1358   :  { %v1084_v54 = vsel %vm248_vm2, %v1079_v60, %v1082_v62  ;;  %v1895_v62 = vmov 0  }
0x1359   :  { %1490 = vmatmul.mubr.msk.f32.vlgmr.msra.gmra.mrb[4].mxu1 %vm250_vm3, %v1084_v54  ;;  %1709 = vset.pattern.permute.xlu1 %v1895_v62 }
0x135a   :  { %1552 = vmatprep.mubr.msk.f32.mxu1 %vm1894_vm4, %v1892_v49  ;;  %1710 = vset.pattern.permute.xlu0 %v1895_v62 }
0x142c   :  { %v1154_v1 = vpop.f32.mrb[4].mxu1 }
0x142d   :  { %v1190_v2 = vadd.f32 %v1154_v1, %v207_v0  ;;  %v1156_v3 = vpop.f32.mrb[5].mxu1 }
0x142e   :  { %v1159_v6 = vadd.f32 %v2071_v61, %v1156_v3 }
0x142f   :  { %1815 = vtanh.f32 %v1190_v2  ;;  %v1492_v8 = vmul.f32 -1.442695, %v1190_v2 }
0x1430   :  { %1817 = vtanh.f32 %v1159_v6  ;;  %v1491_v9 = vmul.f32 -1.442695, %v1159_v6 }
0x1431   :  { %1819 = vpow2.f32 %v1492_v8 }
0x1432   :  { %1821 = vpow2.f32 %v1491_v9 }
0x1439   :  { %v1816_v5 = vpop.eup %1815 }
0x143a   :  { %v1818_v7 = vpop.eup %1817  ;;  %1200 = vrot.lane.b32.xlu1 %v1816_v5, %s1890_s1 }
0x143b   :  { %1169 = vrot.lane.b32.xlu0 %v1818_v7, %s1890_s1  ;;  %v1820_v10 = vpop.eup %1819 }
0x143c   :  { %v1822_v11 = vpop.eup %1821  ;;  %v1194_v4 = vadd.f32 1.0, %v1820_v10 }
0x143d   :  { %v1163_v56 = vadd.f32 1.0, %v1822_v11  ;;  %v1326_v11 = vld [vmem:[%s2286_s5] sm:$0x1] }
0x143e   :  { %1823 = vrcp.f32 %v1194_v4  ;;  %v1341_v4 = vlaneseq }
0x143f   :  { %1825 = vrcp.f32 %v1163_v56 }
0x1440   :  { %v1342_v56 = vshrl.u32 %v1341_v4, 7 }
0x1448   :  { %v1824_v12 = vpop.eup %1823 }
0x1449   :  { %v1826_v13 = vpop.eup %1825  ;;  %v1198_v18 = vmul.f32 %v1824_v12, %v1070_v43 }
0x144a   :  { %v1167_v22 = vmul.f32 %v1826_v13, %v1039_v46 }
0x14ac   :  { %v1201_v21 = vpop.permute.xlu1 %1200 }
0x14ad   :  { %v1203_v55 = vmul.f32 %v1824_v12, %v1201_v21  ;;  %v1170_v15 = vpop.permute.xlu0 %1169 }
0x14ae   :  { %v1172_v16 = vmul.f32 %v1826_v13, %v1170_v15 }
0x14af   :  { %1205 = vrot.lane.b32.xlu1 %v1203_v55, %s1891_s2 }
0x14b0   :  { %1174 = vrot.lane.b32.xlu0 %v1172_v16, %s1891_s2 }
0x1521   :  { %v1206_v20 = vpop.permute.xlu1 %1205 }
0x1522   :  { %v1208_v23 = vadd.f32 %v1206_v20, %v1198_v18  ;;  %v1175_v24 = vpop.permute.xlu0 %1174 }
0x1523   :  { %v1177_v26 = vadd.f32 %v1175_v24, %v1167_v22 }
0x1524   :  { %1827 = vtanh.f32 %v1208_v23 }
0x1525   :  { %1829 = vtanh.f32 %v1177_v26 }
0x152e   :  { %v1828_v27 = vpop.eup %1827 }
0x152f   :  { %v1830_v25 = vpop.eup %1829  ;;  %1211 = vrot.lane.b32.xlu1 %v1828_v27, %s1890_s1 }
0x1530   :  { %1180 = vrot.lane.b32.xlu0 %v1830_v25, %s1890_s1 }
0x15a1   :  { %v1212_v28 = vpop.permute.xlu1 %1211 }
0x15a2   :  { %v1214_v29 = vmul.f32 %v1824_v12, %v1212_v28  ;;  %v1181_v32 = vpop.permute.xlu0 %1180  ;;  %v1343_v12 = vsub.s32 0, %v1342_v56 }
0x15a3   :  { %v1183_v36 = vmul.f32 %v1826_v13, %v1181_v32 }
0x15a4   :  { %1216 = vrot.lane.b32.xlu0 %v1214_v29, %s1891_s2 }
0x15a5   :  { %1219 = vrot.lane.b32.xlu1 %v1183_v36, %s1890_s1 }
0x1616   :  { %v1217_v42 = vpop.permute.xlu0 %1216 }
0x1617   :  { %v1220_v44 = vpop.permute.xlu1 %1219 }
0x1618   :  { %v1222_v48 = vsel %vm248_vm2, %v1217_v42, %v1220_v44 }
0x1619   :  { %1493 = vmatmul.mubr.msk.f32.vlgmr.msra.gmra.mrb[16].mxu0 %vm250_vm3, %v1222_v48 }
0x16ec   :  { %v1292_v57 = vpop.f32.mrb[16].mxu0 }
0x16ed   :  { %v1293_v30 = vpop.f32.mrb[17].mxu0 }
0x16ee   :  { %v1296_v31 = vadd.f32 %v2071_v61, %v1293_v30 }
0x16f0   :  { %1831 = vtanh.f32 %v1296_v31  ;;  %v1494_v52 = vmul.f32 -1.442695, %v1296_v31 }
0x16f2   :  { %1833 = vpow2.f32 %v1494_v52 }
0x16fa   :  { %v1832_v17 = vpop.eup %1831 }
0x16fb   :  { %1306 = vrot.lane.b32.xlu0 %v1832_v17, %s1890_s1 }
0x16fc   :  { %v1834_v34 = vpop.eup %1833 }
0x16fd   :  { %v1300_v35 = vadd.f32 1.0, %v1834_v34 }
0x16ff   :  { %1835 = vrcp.f32 %v1300_v35 }
0x1709   :  { %v1836_v37 = vpop.eup %1835 }
0x170a   :  { %v1304_v61 = vmul.f32 %v1836_v37, %v1177_v26 }
0x176d   :  { %v1307_v39 = vpop.permute.xlu0 %1306 }
0x176e   :  { %v1309_v40 = vmul.f32 %v1836_v37, %v1307_v39 }
0x1770   :  { %1311 = vrot.lane.b32.xlu1 %v1309_v40, %s1891_s2 }
0x1774   :  { %357 = vrot.lane.b32.xlu1 %v2081_v33, %s1891_s2 }
0x1778   :  { %633 = vrot.lane.b32.xlu1 %v2131_v63, %s1891_s2  ;;  %v1893_v63 = vmov 0.0|0.0  }
0x1779   :  { %1683 = vmatprep.subr.bf16.mxu1 %v1893_v63 }
0x177c   :  { %909 = vrot.lane.b32.xlu1 %v2180_v19, %s1891_s2 }
0x1780   :  { %1185 = vrot.lane.b32.xlu1 %v1183_v36, %s1891_s2 }
0x1784   :  { %1338 = vperm.xlu1 %1709, %v1335_v58  }
0x17e2   :  { %v1312_v41 = vpop.permute.xlu1 %1311 }
0x17e3   :  { %v1314_v43 = vadd.f32 %v1312_v41, %v1304_v61 }
0x17e5   :  { %1837 = vtanh.f32 %v1314_v43 }
0x17e6   :  { %v358_v45 = vpop.permute.xlu1 %357 }
0x17e7   :  { %360 = vst.msk [vmem:[#allocation3] sm:$0xff] %vm248_vm2, %v358_v45 }
0x17ea   :  { %v634_v46 = vpop.permute.xlu1 %633 }
0x17eb   :  { %636 = vst.msk [vmem:[#allocation3 + $0x10] sm:$0xff] %vm248_vm2, %v634_v46 }
0x17ee   :  { %v910_v47 = vpop.permute.xlu1 %909 }
0x17ef   :  { %v1838_v33 = vpop.eup %1837  ;;  %912 = vst.msk [vmem:[#allocation3 + $0x20] sm:$0xff] %vm248_vm2, %v910_v47 }
0x17f0   :  { %1317 = vrot.lane.b32.xlu0 %v1838_v33, %s1890_s1 }
0x17f2   :  { %v1186_v19 = vpop.permute.xlu1 %1185  ;;  %v1329_v1 = vld [vmem:[#allocation3 + $0x10] sm:$0xff] }
0x17f3   :  { %1188 = vst.msk [vmem:[#allocation3 + $0x30] sm:$0xff] %vm248_vm2, %v1186_v19 }
0x17f4   :  { %495 = vrot.lane.b32.xlu0 %v2106_v14, %s1891_s2 }
0x17f6   :  { %v1331_v6 = vld [vmem:[#allocation3 + $0x20] sm:$0xff] }
0x17f8   :  { %771 = vrot.lane.b32.xlu0 %v2156_v38, %s1891_s2  ;;  %v1327_v38 = vld [vmem:[#allocation3] sm:$0xff] }
0x17fa   :  { %v1333_v8 = vld [vmem:[#allocation3 + $0x30] sm:$0xff] }
0x17fc   :  { %1047 = vrot.lane.b32.xlu0 %v2204_v59, %s1891_s2 }
0x1803   :  { %v1339_v21 = vpop.permute.xlu1 %1338 }
0x1804   :  { %v1344_v13 = vrot.slane %v1339_v21, %v1343_v12 }
0x1862   :  { %v1318_v50 = vpop.permute.xlu0 %1317 }
0x1863   :  { %v1320_v51 = vmul.f32 %v1836_v37, %v1318_v50 }
0x1865   :  { %1322 = vrot.lane.b32.xlu0 %v1320_v51, %s1891_s2 }
0x1866   :  { %v496_v53 = vpop.permute.xlu0 %495 }
0x1867   :  { %498 = vst.msk [vmem:[#allocation3 + $0x8] sm:$0xff] %vm248_vm2, %v496_v53 }
0x186a   :  { %v772_v60 = vpop.permute.xlu0 %771 }
0x186b   :  { %774 = vst.msk [vmem:[#allocation3 + $0x18] sm:$0xff] %vm248_vm2, %v772_v60 }
0x186e   :  { %v1048_v14 = vpop.permute.xlu0 %1047  ;;  %v1328_v59 = vld [vmem:[#allocation3 + $0x8] sm:$0xff] }
0x186f   :  { %1050 = vst.msk [vmem:[#allocation3 + $0x28] sm:$0xff] %vm248_vm2, %v1048_v14  ;;  %v1684_v54 = vpack.c.bf16 %v1328_v59, %v1327_v38 }
0x1871   :  { %1686 = vmatpush3.bf16.xpose.msk.msra.mxu1 %vm2251_vm5, %v1684_v54 }
0x1872   :  { %1687 = vmatprep.subr.bf16.mxu1 %v1893_v63  ;;  %v1330_v0 = vld [vmem:[#allocation3 + $0x18] sm:$0xff] }
0x1873   :  { %v1688_v2 = vpack.c.bf16 %v1330_v0, %v1329_v1 }
0x1876   :  { %v1332_v3 = vld [vmem:[#allocation3 + $0x28] sm:$0xff] }
0x1877   :  { %v1692_v5 = vpack.c.bf16 %v1332_v3, %v1331_v6 }
0x1879   :  { %1690 = vmatpush3.bf16.xpose.msk.msra.mxu1 %vm2251_vm5, %v1688_v2 }
0x187a   :  { %1691 = vmatprep.subr.bf16.mxu1 %v1893_v63 }
0x1881   :  { %1694 = vmatpush3.bf16.xpose.msk.msra.mxu1 %vm2251_vm5, %v1692_v5 }
0x1882   :  { %1695 = vmatprep.subr.bf16.mxu1 %v1893_v63 }
0x18d7   :  { %v1323_v7 = vpop.permute.xlu0 %1322 }
0x18d8   :  { %1325 = vst.msk [vmem:[#allocation3 + $0x38] sm:$0xff] %vm248_vm2, %v1323_v7 }
0x18df   :  { %v1334_v9 = vld [vmem:[#allocation3 + $0x38] sm:$0xff] }
0x18e0   :  { %v1696_v10 = vpack.c.bf16 %v1334_v9, %v1333_v8 }
0x18e2   :  { %1698 = vmatpush3.bf16.xpose.msk.msra.mxu1 %vm2251_vm5, %v1696_v10 }
0x18e9   :  { %1553 = vmatmul.mubr.msk.f32.vlgmr.msra.gmra.mrb[6].mxu1 %vm248_vm2, %v1326_v11 }
0x19bc   :  { %v1438_v55 = vpop.f32.mrb[6].mxu1 }
0x19bd   :  { %v1439_v15 = vadd.f32 %v1438_v55, %v1344_v13  ;;  %v1554_v16 = vpop.f32.mrb[7].mxu1 }
0x19bf   :  { %v1442_v18 = vmax.f32 %v1439_v15, 0.0 }
0x19c1   :  { %1444 = vst.msk [vmem:[#allocation8] sm:$0x1] %vm1443_vm6, %v1442_v18 }
0x19c2   :  { %1872 = shalt.err (!%p1869_p12)
}
0x19c3   :  { %s1873_s18 = scalar_lea.hbm %s2288_s7, 16 }
0x19c4   :  { %p1874_p13 = scmp.ne.s32.totalorder %s2288_s7, %s1873_s18  ;;  %p1877_p0 = scmp.lt.u32.totalorder %s1873_s18, %s2288_s7 }
0x19c6   :  { %p1879_p1 = pnand %p1877_p0, %p1874_p13 }
0x19c8   :  { %1882 = shalt.err (!%p1879_p1)
}
0x19c9   :  { %1454 = dma.vmem_to_hbm [thread:$0]  %s1452_s14, 16, %s2288_s7, [#allocation7]  }
0x19ca   :  { %1885 = dma.done.wait [#allocation7], 16  }
0x19cb   :  { %1886 = vsyncadd [#allocation7], 4294967280 }
0x19cc   :  { %1458 = vsyncpa [#allocation6], 1 }
0x19cd   :  { %1459 = vsyncpa [#allocation7], 1 }

</bundles_post_ra>
